<compile_context>
chip_gen: v5e
topology: v5e:2x2
jax: 0.10.0
libtpu: 0.0.40
codegen_flags: <defaults>
</compile_context>

<pallas_src>
import functools

import jax
import jax.numpy as jnp
from jax import lax
from jax.experimental import pallas as pl
from jax.experimental.pallas import tpu as pltpu


def _round_up(x, m):
    return ((x + m - 1) // m) * m


def _largest_divisor(n, candidates):
    for c in candidates:
        if n % c == 0:
            return c
    return candidates[-1]


# ---------------------------------------------------------------------------
# Pass 1: fused   f32 adj tile  ->  (bf16 adj tile, d^-0.5 per row)
# ---------------------------------------------------------------------------
def _degree_cast_kernel(adj_ref, adj16_ref, dinv_ref, acc_ref, *, lanes):
    k = pl.program_id(1)

    @pl.when(k == 0)
    def _():
        acc_ref[...] = jnp.zeros_like(acc_ref)

    a = adj_ref[...]                                # (TMD, TKD) f32
    adj16_ref[...] = a.astype(adj16_ref.dtype)      # bf16 copy for the hot matmul

    ones = (a > 0).astype(jnp.float32)
    # Per-lane partial sums: VPU adds only; defer the cross-lane (XLU) reduce.
    partial = acc_ref[...]
    for j in range(lanes):
        partial = partial + ones[:, j * 128:(j + 1) * 128]
    acc_ref[...] = partial

    @pl.when(k == pl.num_programs(1) - 1)
    def _():
        deg = jnp.sum(acc_ref[...], axis=1, keepdims=True)   # one XLU reduce / row tile
        # Guard isolated / padded rows (reference would produce inf/NaN there).
        dinv_ref[...] = jnp.where(deg > 0, lax.rsqrt(deg), 0.0)


# ---------------------------------------------------------------------------
# Pass 2: acc += adj16_tile @ xs_tile ; finalize: out = d_row * acc + bias
# ---------------------------------------------------------------------------
def _gcn_matmul_kernel(adj_ref, xs_ref, dinv_ref, b_ref, o_ref, acc_ref):
    k = pl.program_id(1)

    @pl.when(k == 0)
    def _():
        acc_ref[...] = jnp.zeros_like(acc_ref)

    acc_ref[...] += jnp.dot(adj_ref[...], xs_ref[...],
                            preferred_element_type=jnp.float32)

    @pl.when(k == pl.num_programs(1) - 1)
    def _():
        o_ref[...] = (dinv_ref[...] * acc_ref[...] + b_ref[...]).astype(o_ref.dtype)


def _gcn_conv_impl(adj_mat, node_state, weight, bias):
    N = adj_mat.shape[0]
    C_in, C_out = weight.shape
    f32, bf16 = jnp.float32, jnp.bfloat16

    # ---- padding / tile selection -----------------------------------------
    N_pad = _round_up(N, 256)                      # pad granularity 256, not TK
    C_pad = _round_up(max(C_out, 128), 128)        # lane-dense output stores

    TM = 512 if (N_pad >= 2048 and N_pad % 512 == 0) else 256
    TK = _largest_divisor(N_pad, (2048, 1024, 512, 256))
    TMD, TKD = TM, TK                              # degree/cast pass tiles

    # VMEM budget (conservative, double-buffered) for keeping xs resident.
    def _pass2_vmem(resident):
        adj_buf = 2 * TM * TK * 2
        xs_buf = (2 * N_pad * C_pad * 2) if resident else (2 * TK * C_pad * 2)
        acc = TM * C_pad * 4
        out_buf = 2 * TM * C_pad * 4
        misc = 4 * (TM + C_pad) * 4
        return adj_buf + xs_buf + acc + out_buf + misc

    VMEM_BUDGET = 28 * 1024 * 1024                 # headroom under 32 MiB scoped (v7x)
    xs_resident = _pass2_vmem(True) <= VMEM_BUDGET

    cparams = pltpu.CompilerParams(
        dimension_semantics=("parallel", "arbitrary"),
        vmem_limit_bytes=32 * 1024 * 1024,
    )

    # ---- prologue (no-op pads when shapes are already aligned) ------------
    adj_p = jnp.pad(adj_mat.astype(f32), ((0, N_pad - N), (0, N_pad - N)))
    x_p = jnp.pad(node_state.astype(f32), ((0, N_pad - N), (0, 0)))
    w_p = jnp.pad(weight.astype(f32), ((0, 0), (0, C_pad - C_out)))
    b_p = jnp.pad(bias.reshape(1, C_out).astype(f32), ((0, 0), (0, C_pad - C_out)))

    # ---- pass 1: fused bf16 cast + degree (adj read once in f32) ----------
    adj16, dinv = pl.pallas_call(
        functools.partial(_degree_cast_kernel, lanes=TKD // 128),
        out_shape=(jax.ShapeDtypeStruct((N_pad, N_pad), bf16),
                   jax.ShapeDtypeStruct((N_pad, 1), f32)),
        grid_spec=pltpu.PrefetchScalarGridSpec(
            num_scalar_prefetch=0,
            grid=(N_pad // TMD, N_pad // TKD),
            in_specs=[pl.BlockSpec((TMD, TKD), lambda i, k: (i, k))],
            out_specs=(pl.BlockSpec((TMD, TKD), lambda i, k: (i, k)),
                       pl.BlockSpec((TMD, 1), lambda i, k: (i, 0))),
            scratch_shapes=[pltpu.VMEM((TMD, 128), f32)],
        ),
        compiler_params=cparams,
    )(adj_p)

    # ---- tiny O(N*C) projection; fold column half of D^-1/2 into xs -------
    xs = (dinv * (x_p @ w_p)).astype(bf16)         # [N_pad, C_pad] bf16

    # ---- pass 2: tiled bf16 MXU matmul adj16 @ xs --------------------------
    if xs_resident:
        # Full-array block, constant index_map -> copied into VMEM once,
        # never re-streamed per row tile.
        xs_spec = pl.BlockSpec((N_pad, C_pad), lambda i, k: (0, 0))
    else:
        xs_spec = pl.BlockSpec((TK, C_pad), lambda i, k: (k, 0))   # streaming fallback

    out_p = pl.pallas_call(
        _gcn_matmul_kernel,
        out_shape=jax.ShapeDtypeStruct((N_pad, C_pad), f32),
        grid_spec=pltpu.PrefetchScalarGridSpec(
            num_scalar_prefetch=0,
            grid=(N_pad // TM, N_pad // TK),
            in_specs=[
                pl.BlockSpec((TM, TK), lambda i, k: (i, k)),       # bf16 adj tile
                xs_spec,                                           # scaled features
                pl.BlockSpec((TM, 1), lambda i, k: (i, 0)),        # row scale d^-0.5
                pl.BlockSpec((1, C_pad), lambda i, k: (0, 0)),     # bias
            ],
            out_specs=pl.BlockSpec((TM, C_pad), lambda i, k: (i, 0)),
            scratch_shapes=[pltpu.VMEM((TM, C_pad), f32)],
        ),
        compiler_params=cparams,
    )(adj16, xs, dinv, b_p)

    return out_p[:N, :C_out].astype(node_state.dtype)


gcn_conv = jax.jit(_gcn_conv_impl)


def reference_gcn_conv(adj_mat, node_state, weight, bias):
    """Pure-JAX f32 reference mirroring the PyTorch forward."""
    deg = jnp.sum((adj_mat > 0), axis=1).astype(jnp.float32)
    d_inv_sqrt = jnp.power(deg, -0.5)
    lap = jnp.diag(d_inv_sqrt) @ adj_mat @ jnp.diag(d_inv_sqrt)
    return lap @ node_state @ weight + bias


if __name__ == "__main__":
    N, C_in, C_out = 16, 8, 32

    key = jax.random.PRNGKey(0)
    k_adj, k_x, k_w, k_b = jax.random.split(key, 4)

    # Sparse-ish symmetric adjacency with self-loops (every node has degree > 0).
    raw = jax.random.uniform(k_adj, (N, N), dtype=jnp.float32)
    raw = (raw + raw.T) * 0.5
    adj = jnp.where(raw > 0.6, raw, 0.0) + jnp.eye(N, dtype=jnp.float32)

    node_state = jax.random.normal(k_x, (N, C_in), dtype=jnp.float32)

    # init_type='v1': uniform(-1/C_in, 1/C_in)
    bound = 1.0 / C_in
    weight = jax.random.uniform(k_w, (C_in, C_out), dtype=jnp.float32,
                                minval=-bound, maxval=bound)
    bias = jax.random.uniform(k_b, (C_out,), dtype=jnp.float32,
                              minval=-bound, maxval=bound)

    out = gcn_conv(adj, node_state, weight, bias)
    out = jax.block_until_ready(out)

    ref = reference_gcn_conv(adj, node_state, weight, bias)
    assert out.shape == (N, C_out)
    # bf16 MXU operands with f32 accumulation -> relaxed tolerance vs f32 ref.
    assert jnp.allclose(out, ref, atol=2e-2, rtol=2e-2)

    print("KERNEL_OK")
</pallas_src>

<mosaic_0001>
module attributes {stable_mosaic.version = 11 : i64} {
  func.func @_degree_cast_kernel(%arg0: i32, %arg1: i32, %arg2: memref<256x256xf32, #tpu.memory_space<vmem>>, %arg3: memref<256x256xbf16, #tpu.memory_space<vmem>>, %arg4: memref<256x1xf32, #tpu.memory_space<vmem>>, %arg5: memref<256x128xf32, #tpu.memory_space<vmem>>) attributes {dimension_semantics = [#tpu.dimension_semantics<parallel>, #tpu.dimension_semantics<arbitrary>], iteration_bounds = array<i64: 1, 1>, scalar_prefetch = 0 : i64, scratch_operands = 1 : i64, tpu.core_type = #tpu.core_type<tc>, window_params = [{transform_indices = @transform_0, window_bounds = array<i64: 256, 256>}, {transform_indices = @transform_1, window_bounds = array<i64: 256, 256>}, {transform_indices = @transform_2, window_bounds = array<i64: 256, 1>}]} {
    %c0_i32 = arith.constant 0 : i32
    %0 = arith.cmpi eq, %arg1, %c0_i32 : i32
    %1 = arith.extui %0 : i1 to i32
    %c0_i32_0 = arith.constant 0 : i32
    %2 = arith.cmpi ne, %1, %c0_i32_0 : i32
    scf.if %2 {
      %cst_10 = arith.constant 0.000000e+00 : f32
      %19 = vector.broadcast %cst_10 : f32 to vector<256x128xf32>
      %c0_11 = arith.constant 0 : index
      %c0_12 = arith.constant 0 : index
      %20 = vector.load %arg5[%c0_11, %c0_12] : memref<256x128xf32, #tpu.memory_space<vmem>>, vector<256x128xf32>
      tpu.vector_store %arg5[%c0_11, %c0_12], %19 {strides = array<i32>} : memref<256x128xf32, #tpu.memory_space<vmem>>, vector<256x128xf32>,
    } else {
    }
    %c0 = arith.constant 0 : index
    %c0_1 = arith.constant 0 : index
    %3 = vector.load %arg2[%c0, %c0_1] : memref<256x256xf32, #tpu.memory_space<vmem>>, vector<256x256xf32>
    %4 = arith.truncf %3 : vector<256x256xf32> to vector<256x256xbf16>
    %c0_2 = arith.constant 0 : index
    %c0_3 = arith.constant 0 : index
    %5 = vector.load %arg3[%c0_2, %c0_3] : memref<256x256xbf16, #tpu.memory_space<vmem>>, vector<256x256xbf16>
    tpu.vector_store %arg3[%c0_2, %c0_3], %4 {strides = array<i32>} : memref<256x256xbf16, #tpu.memory_space<vmem>>, vector<256x256xbf16>,
    %cst = arith.constant 0.000000e+00 : f32
    %6 = vector.broadcast %cst : f32 to vector<256x256xf32>
    %7 = arith.cmpf ogt, %3, %6 : vector<256x256xf32>
    %8 = arith.extui %7 : vector<256x256xi1> to vector<256x256xi32>
    %9 = arith.sitofp %8 : vector<256x256xi32> to vector<256x256xf32>
    %c0_4 = arith.constant 0 : index
    %c0_5 = arith.constant 0 : index
    %10 = vector.load %arg5[%c0_4, %c0_5] : memref<256x128xf32, #tpu.memory_space<vmem>>, vector<256x128xf32>
    %11 = vector.extract_strided_slice %9 {offsets = [0, 0], sizes = [256, 128], strides = [1, 1]} : vector<256x256xf32> to vector<256x128xf32>
    %12 = arith.addf %10, %11 : vector<256x128xf32>
    %13 = vector.extract_strided_slice %9 {offsets = [0, 128], sizes = [256, 128], strides = [1, 1]} : vector<256x256xf32> to vector<256x128xf32>
    %14 = arith.addf %12, %13 : vector<256x128xf32>
    %c0_6 = arith.constant 0 : index
    %c0_7 = arith.constant 0 : index
    %15 = vector.load %arg5[%c0_6, %c0_7] : memref<256x128xf32, #tpu.memory_space<vmem>>, vector<256x128xf32>
    tpu.vector_store %arg5[%c0_6, %c0_7], %14 {strides = array<i32>} : memref<256x128xf32, #tpu.memory_space<vmem>>, vector<256x128xf32>,
    %c0_i32_8 = arith.constant 0 : i32
    %16 = arith.cmpi eq, %arg1, %c0_i32_8 : i32
    %17 = arith.extui %16 : i1 to i32
    %c0_i32_9 = arith.constant 0 : i32
    %18 = arith.cmpi ne, %17, %c0_i32_9 : i32
    scf.if %18 {
      %c0_10 = arith.constant 0 : index
      %c0_11 = arith.constant 0 : index
      %19 = vector.load %arg5[%c0_10, %c0_11] : memref<256x128xf32, #tpu.memory_space<vmem>>, vector<256x128xf32>
      %cst_12 = arith.constant dense<0.000000e+00> : vector<256xf32>
      %20 = vector.multi_reduction <add>, %19, %cst_12 [1] : vector<256x128xf32> to vector<256xf32>
      %21 = vector.shape_cast %20 : vector<256xf32> to vector<256x1xf32>
      %cst_13 = arith.constant 0.000000e+00 : f32
      %22 = vector.broadcast %cst_13 : f32 to vector<256x1xf32>
      %23 = arith.cmpf ogt, %21, %22 : vector<256x1xf32>
      %24 = math.rsqrt %21 : vector<256x1xf32>
      %cst_14 = arith.constant 0.000000e+00 : f32
      %25 = vector.broadcast %cst_14 : f32 to vector<256x1xf32>
      %26 = arith.select %23, %24, %25 : vector<256x1xi1>, vector<256x1xf32>
      %c0_15 = arith.constant 0 : index
      %c0_16 = arith.constant 0 : index
      %27 = vector.load %arg4[%c0_15, %c0_16] : memref<256x1xf32, #tpu.memory_space<vmem>>, vector<256x1xf32>
      tpu.vector_store %arg4[%c0_15, %c0_16], %26 {strides = array<i32>} : memref<256x1xf32, #tpu.memory_space<vmem>>, vector<256x1xf32>,
    } else {
    }
    return
  }
  func.func @transform_0(%arg0: i32, %arg1: i32) -> (i32, i32) {
    %c0_i32 = arith.constant 0 : i32
    return %arg0, %arg1 : i32, i32
  }
  func.func @transform_1(%arg0: i32, %arg1: i32) -> (i32, i32) {
    %c0_i32 = arith.constant 0 : i32
    return %arg0, %arg1 : i32, i32
  }
  func.func @transform_2(%arg0: i32, %arg1: i32) -> (i32, i32) {
    %c0_i32 = arith.constant 0 : i32
    %c0_i32_0 = arith.constant 0 : i32
    return %arg0, %c0_i32 : i32, i32
  }
}

module attributes {stable_mosaic.version = 11 : i64} {
  func.func @_gcn_matmul_kernel(%arg0: i32, %arg1: i32, %arg2: memref<256x256xbf16, #tpu.memory_space<vmem>>, %arg3: memref<256x128xbf16, #tpu.memory_space<vmem>>, %arg4: memref<256x1xf32, #tpu.memory_space<vmem>>, %arg5: memref<1x128xf32, #tpu.memory_space<vmem>>, %arg6: memref<256x128xf32, #tpu.memory_space<vmem>>, %arg7: memref<256x128xf32, #tpu.memory_space<vmem>>) attributes {dimension_semantics = [#tpu.dimension_semantics<parallel>, #tpu.dimension_semantics<arbitrary>], iteration_bounds = array<i64: 1, 1>, scalar_prefetch = 0 : i64, scratch_operands = 1 : i64, tpu.core_type = #tpu.core_type<tc>, window_params = [{transform_indices = @transform_0, window_bounds = array<i64: 256, 256>}, {pipeline_mode = #tpu.pipeline_mode<synchronous>, transform_indices = @transform_1, window_bounds = array<i64: 256, 128>}, {transform_indices = @transform_2, window_bounds = array<i64: 256, 1>}, {pipeline_mode = #tpu.pipeline_mode<synchronous>, transform_indices = @transform_3, window_bounds = array<i64: 1, 128>}, {transform_indices = @transform_4, window_bounds = array<i64: 256, 128>}]} {
    %c0_i32 = arith.constant 0 : i32
    %0 = arith.cmpi eq, %arg1, %c0_i32 : i32
    %1 = arith.extui %0 : i1 to i32
    %c0_i32_0 = arith.constant 0 : i32
    %2 = arith.cmpi ne, %1, %c0_i32_0 : i32
    scf.if %2 {
      %cst_10 = arith.constant 0.000000e+00 : f32
      %12 = vector.broadcast %cst_10 : f32 to vector<256x128xf32>
      %c0_11 = arith.constant 0 : index
      %c0_12 = arith.constant 0 : index
      %13 = vector.load %arg7[%c0_11, %c0_12] : memref<256x128xf32, #tpu.memory_space<vmem>>, vector<256x128xf32>
      tpu.vector_store %arg7[%c0_11, %c0_12], %12 {strides = array<i32>} : memref<256x128xf32, #tpu.memory_space<vmem>>, vector<256x128xf32>,
    } else {
    }
    %c0 = arith.constant 0 : index
    %c0_1 = arith.constant 0 : index
    %3 = vector.load %arg7[%c0, %c0_1] : memref<256x128xf32, #tpu.memory_space<vmem>>, vector<256x128xf32>
    %c0_2 = arith.constant 0 : index
    %c0_3 = arith.constant 0 : index
    %4 = vector.load %arg2[%c0_2, %c0_3] : memref<256x256xbf16, #tpu.memory_space<vmem>>, vector<256x256xbf16>
    %c0_4 = arith.constant 0 : index
    %c0_5 = arith.constant 0 : index
    %5 = vector.load %arg3[%c0_4, %c0_5] : memref<256x128xbf16, #tpu.memory_space<vmem>>, vector<256x128xbf16>
    %cst = arith.constant dense<0.000000e+00> : vector<256x128xf32>
    %6 = tpu.matmul %4, %5, %cst {dimension_numbers = #tpu.dot_dimension_numbers<[1], [0], [0], [1], [0, 0, 1, 1], [], []>} : vector<256x256xbf16>, vector<256x128xbf16>, vector<256x128xf32> -> vector<256x128xf32>
    %7 = arith.addf %3, %6 : vector<256x128xf32>
    %c0_6 = arith.constant 0 : index
    %c0_7 = arith.constant 0 : index
    %8 = vector.load %arg7[%c0_6, %c0_7] : memref<256x128xf32, #tpu.memory_space<vmem>>, vector<256x128xf32>
    tpu.vector_store %arg7[%c0_6, %c0_7], %7 {strides = array<i32>} : memref<256x128xf32, #tpu.memory_space<vmem>>, vector<256x128xf32>,
    %c0_i32_8 = arith.constant 0 : i32
    %9 = arith.cmpi eq, %arg1, %c0_i32_8 : i32
    %10 = arith.extui %9 : i1 to i32
    %c0_i32_9 = arith.constant 0 : i32
    %11 = arith.cmpi ne, %10, %c0_i32_9 : i32
    scf.if %11 {
      %c0_10 = arith.constant 0 : index
      %c0_11 = arith.constant 0 : index
      %12 = vector.load %arg4[%c0_10, %c0_11] : memref<256x1xf32, #tpu.memory_space<vmem>>, vector<256x1xf32>
      %c0_12 = arith.constant 0 : index
      %c0_13 = arith.constant 0 : index
      %13 = vector.load %arg7[%c0_12, %c0_13] : memref<256x128xf32, #tpu.memory_space<vmem>>, vector<256x128xf32>
      %14 = vector.broadcast %12 : vector<256x1xf32> to vector<256x128xf32>
      %15 = arith.mulf %14, %13 : vector<256x128xf32>
      %c0_14 = arith.constant 0 : index
      %c0_15 = arith.constant 0 : index
      %16 = vector.load %arg5[%c0_14, %c0_15] : memref<1x128xf32, #tpu.memory_space<vmem>>, vector<1x128xf32>
      %17 = vector.broadcast %16 : vector<1x128xf32> to vector<256x128xf32>
      %18 = arith.addf %15, %17 : vector<256x128xf32>
      %c0_16 = arith.constant 0 : index
      %c0_17 = arith.constant 0 : index
      %19 = vector.load %arg6[%c0_16, %c0_17] : memref<256x128xf32, #tpu.memory_space<vmem>>, vector<256x128xf32>
      tpu.vector_store %arg6[%c0_16, %c0_17], %18 {strides = array<i32>} : memref<256x128xf32, #tpu.memory_space<vmem>>, vector<256x128xf32>,
    } else {
    }
    return
  }
  func.func @transform_0(%arg0: i32, %arg1: i32) -> (i32, i32) {
    %c0_i32 = arith.constant 0 : i32
    return %arg0, %arg1 : i32, i32
  }
  func.func @transform_1(%arg0: i32, %arg1: i32) -> (i32, i32) {
    %c0_i32 = arith.constant 0 : i32
    %c0_i32_0 = arith.constant 0 : i32
    %c0_i32_1 = arith.constant 0 : i32
    return %c0_i32, %c0_i32_0 : i32, i32
  }
  func.func @transform_2(%arg0: i32, %arg1: i32) -> (i32, i32) {
    %c0_i32 = arith.constant 0 : i32
    %c0_i32_0 = arith.constant 0 : i32
    return %arg0, %c0_i32 : i32, i32
  }
  func.func @transform_3(%arg0: i32, %arg1: i32) -> (i32, i32) {
    %c0_i32 = arith.constant 0 : i32
    %c0_i32_0 = arith.constant 0 : i32
    %c0_i32_1 = arith.constant 0 : i32
    return %c0_i32, %c0_i32_0 : i32, i32
  }
  func.func @transform_4(%arg0: i32, %arg1: i32) -> (i32, i32) {
    %c0_i32 = arith.constant 0 : i32
    %c0_i32_0 = arith.constant 0 : i32
    return %arg0, %c0_i32 : i32, i32
  }
}

</mosaic_0001>

<bundles_post_ra>
// kernel: _gcn_conv_impl.2
= control target key start
LH: loop header
LB: loop body
LE: loop exit
PB: predicated region body
PF: predicated region fallthrough
CT: control target
= control target key end

     0   :  { %v1147_v7 = vmov 0.0   ;;  %s2256_s0 = inlined_call_operand.vmem [shape: f32[256,256], index: 0, kind: input, shape index: {}]   ;;  %s2257_s1 = inlined_call_operand.vmem [shape: bf16[256,256], index: 1, kind: output, shape index: {0}]   ;;  %s2258_s2 = inlined_call_operand.vmem [shape: f32[256,1], index: 2, kind: output, shape index: {1}]  }
   0x1   :  { %v54_v0 = vld [vmem:[%s2256_s0 + $0x40] sm:$0xff]  ;;  %v55_v1 = vld [vmem:[%s2256_s0 + $0x48] sm:$0xff]  ;;  %v56_v11 = vld [vmem:[%s2256_s0 + $0x50] sm:$0xff] }
   0x2   :  { %v50_v2 = vld [vmem:[%s2256_s0 + $0x20] sm:$0xff]  ;;  %vm182_vm0 = vcmp.gt.f32.partialorder %v54_v0, 0.0  ;;  %vm183_vm1 = vcmp.gt.f32.partialorder %v55_v1, 0.0  ;;  %v114_v3 = vpack.c.bf16 %v55_v1, %v54_v0  ;;  %v51_v4 = vld [vmem:[%s2256_s0 + $0x28] sm:$0xff]  ;;  %v57_v12 = vld [vmem:[%s2256_s0 + $0x58] sm:$0xff]  ;;  %vm184_vm6 = vcmp.gt.f32.partialorder %v56_v11, 0.0 }
   0x3   :  { %vm178_vm2 = vcmp.gt.f32.partialorder %v50_v2, 0.0  ;;  %v46_v5 = vld [vmem:[%s2256_s0] sm:$0xff]  ;;  %v47_v6 = vld [vmem:[%s2256_s0 + $0x8] sm:$0xff]  ;;  %v1026_v8 = vsel %vm182_vm0, 1.0, %v1147_v7  ;;  %v1027_v9 = vsel %vm183_vm1, 1.0, %v1147_v7  ;;  %vm179_vm3 = vcmp.gt.f32.partialorder %v51_v4, 0.0 }
   0x4   :  { %v1022_v10 = vsel %vm178_vm2, 1.0, %v1147_v7  ;;  %v434_v13 = vadd.f32 %v1027_v9, %v1026_v8  ;;  %146 = vst [vmem:[%s2257_s1 + $0x20] sm:$0xff] %v114_v3  ;;  %v1023_v14 = vsel %vm179_vm3, 1.0, %v1147_v7  ;;  %v112_v15 = vpack.c.bf16 %v51_v4, %v50_v2  ;;  %v52_v19 = vld [vmem:[%s2256_s0 + $0x30] sm:$0xff]  ;;  %v53_v20 = vld [vmem:[%s2256_s0 + $0x38] sm:$0xff]  ;;  %v62_v30 = vld [vmem:[%s2256_s0 + $0x80] sm:$0xff] }
   0x5   :  { %vm174_vm4 = vcmp.gt.f32.partialorder %v46_v5, 0.0  ;;  %v432_v16 = vadd.f32 %v1023_v14, %v1022_v10  ;;  %vm175_vm5 = vcmp.gt.f32.partialorder %v47_v6, 0.0  ;;  %v110_v18 = vpack.c.bf16 %v47_v6, %v46_v5  ;;  %v48_v23 = vld [vmem:[%s2256_s0 + $0x10] sm:$0xff]  ;;  %v49_v24 = vld [vmem:[%s2256_s0 + $0x18] sm:$0xff]  ;;  %v63_v33 = vld [vmem:[%s2256_s0 + $0x88] sm:$0xff] }
   0x6   :  { %v1018_v17 = vsel %vm174_vm4, 1.0, %v1147_v7  ;;  %537 = vadd.xlane.f32.xlu2 %v434_v13  ;;  %144 = vst [vmem:[%s2257_s1 + $0x10] sm:$0xff] %v112_v15  ;;  %v1019_v21 = vsel %vm175_vm5, 1.0, %v1147_v7  ;;  %v115_v22 = vpack.c.bf16 %v57_v12, %v56_v11  ;;  %vm185_vm7 = vcmp.gt.f32.partialorder %v57_v12, 0.0  ;;  %v60_v38 = vld [vmem:[%s2256_s0 + $0x70] sm:$0xff]  ;;  %v61_v39 = vld [vmem:[%s2256_s0 + $0x78] sm:$0xff] }
   0x7   :  { %533 = vadd.xlane.f32.xlu1 %v432_v16  ;;  %v430_v25 = vadd.f32 %v1019_v21, %v1018_v17  ;;  %142 = vst [vmem:[%s2257_s1] sm:$0xff] %v110_v18  ;;  %v1028_v26 = vsel %vm184_vm6, 1.0, %v1147_v7  ;;  %v1029_v27 = vsel %vm185_vm7, 1.0, %v1147_v7  ;;  %v113_v28 = vpack.c.bf16 %v53_v20, %v52_v19  ;;  %v58_v42 = vld [vmem:[%s2256_s0 + $0x60] sm:$0xff]  ;;  %v59_v43 = vld [vmem:[%s2256_s0 + $0x68] sm:$0xff]  ;;  %v68_v46 = vld [vmem:[%s2256_s0 + $0xb0] sm:$0xff] }
   0x8   :  { %147 = vst [vmem:[%s2257_s1 + $0x28] sm:$0xff] %v115_v22  ;;  %vm180_vm8 = vcmp.gt.f32.partialorder %v52_v19, 0.0  ;;  %vm181_vm9 = vcmp.gt.f32.partialorder %v53_v20, 0.0  ;;  %v111_v29 = vpack.c.bf16 %v49_v24, %v48_v23  ;;  %vm176_vm10 = vcmp.gt.f32.partialorder %v48_v23, 0.0  ;;  %v69_v47 = vld [vmem:[%s2256_s0 + $0xb8] sm:$0xff]  ;;  %v66_v49 = vld [vmem:[%s2256_s0 + $0xa0] sm:$0xff] }
   0x9   :  { %529 = vadd.xlane.f32.xlu0 %v430_v25  ;;  %145 = vst [vmem:[%s2257_s1 + $0x18] sm:$0xff] %v113_v28  ;;  %v1024_v31 = vsel %vm180_vm8, 1.0, %v1147_v7  ;;  %v1025_v32 = vsel %vm181_vm9, 1.0, %v1147_v7  ;;  %vm177_vm11 = vcmp.gt.f32.partialorder %v49_v24, 0.0  ;;  %v435_v34 = vadd.f32 %v1029_v27, %v1028_v26  ;;  %v67_v52 = vld [vmem:[%s2256_s0 + $0xa8] sm:$0xff]  ;;  %v64_v56 = vld [vmem:[%s2256_s0 + $0x90] sm:$0xff] }
   0xa   :  { %143 = vst [vmem:[%s2257_s1 + $0x8] sm:$0xff] %v111_v29  ;;  %v1020_v35 = vsel %vm176_vm10, 1.0, %v1147_v7  ;;  %v1021_v36 = vsel %vm177_vm11, 1.0, %v1147_v7  ;;  %v118_v37 = vpack.c.bf16 %v63_v33, %v62_v30  ;;  %v433_v40 = vadd.f32 %v1025_v32, %v1024_v31  ;;  %v65_v57 = vld [vmem:[%s2256_s0 + $0x98] sm:$0xff]  ;;  %v74_v62 = vld [vmem:[%s2256_s0 + $0xe0] sm:$0xff]  ;;  %v75_v63 = vld [vmem:[%s2256_s0 + $0xe8] sm:$0xff] }
   0xb   :  { %v117_v41 = vpack.c.bf16 %v61_v39, %v60_v38  ;;  %vm190_vm12 = vcmp.gt.f32.partialorder %v62_v30, 0.0  ;;  %vm191_vm13 = vcmp.gt.f32.partialorder %v63_v33, 0.0  ;;  %v431_v44 = vadd.f32 %v1021_v36, %v1020_v35  ;;  %v1298_v2 = vld [vmem:[%s2256_s0 + $0xd0] sm:$0xff]  ;;  %v1303_v3 = vld [vmem:[%s2256_s0 + $0xd8] sm:$0xff]  ;;  %v1313_v6 = vld [vmem:[%s2256_s0 + $0xc0] sm:$0xff] }
   0xc   :  { %150 = vst [vmem:[%s2257_s1 + $0x40] sm:$0xff] %v118_v37  ;;  %vm188_vm14 = vcmp.gt.f32.partialorder %v60_v38, 0.0  ;;  %vm189_vm15 = vcmp.gt.f32.partialorder %v61_v39, 0.0  ;;  %v116_v45 = vpack.c.bf16 %v59_v43, %v58_v42  ;;  %v121_v48 = vpack.c.bf16 %v69_v47, %v68_v46  ;;  %v1318_v8 = vld [vmem:[%s2256_s0 + $0xc8] sm:$0xff]  ;;  %v1329_v11 = vld [vmem:[%s2256_s0 + $0x110] sm:$0xff]  ;;  %v1334_v12 = vld [vmem:[%s2256_s0 + $0x118] sm:$0xff] }
   0xd   :  { %149 = vst [vmem:[%s2257_s1 + $0x38] sm:$0xff] %v117_v41  ;;  %v1034_v50 = vsel %vm190_vm12, 1.0, %v1147_v7  ;;  %v1035_v51 = vsel %vm191_vm13, 1.0, %v1147_v7  ;;  %vm186_vm0 = vcmp.gt.f32.partialorder %v58_v42, 0.0  ;;  %vm187_vm1 = vcmp.gt.f32.partialorder %v59_v43, 0.0  ;;  %v1349_v17 = vld [vmem:[%s2256_s0 + $0x100] sm:$0xff] }
   0xe   :  { %539 = vadd.xlane.f32.xlu2 %v435_v34  ;;  %148 = vst [vmem:[%s2257_s1 + $0x30] sm:$0xff] %v116_v45  ;;  %v1032_v53 = vsel %vm188_vm14, 1.0, %v1147_v7  ;;  %v1033_v54 = vsel %vm189_vm15, 1.0, %v1147_v7  ;;  %v120_v55 = vpack.c.bf16 %v67_v52, %v66_v49  ;;  %v119_v58 = vpack.c.bf16 %v65_v57, %v64_v56  ;;  %v1354_v18 = vld [vmem:[%s2256_s0 + $0x108] sm:$0xff]  ;;  %v1364_v20 = vld [vmem:[%s2256_s0 + $0xf0] sm:$0xff]  ;;  %v1369_v21 = vld [vmem:[%s2256_s0 + $0xf8] sm:$0xff] }
   0xf   :  { %535 = vadd.xlane.f32.xlu1 %v433_v40  ;;  %153 = vst [vmem:[%s2257_s1 + $0x58] sm:$0xff] %v121_v48  ;;  %v438_v59 = vadd.f32 %v1035_v51, %v1034_v50  ;;  %v1030_v60 = vsel %vm186_vm0, 1.0, %v1147_v7  ;;  %v1031_v61 = vsel %vm187_vm1, 1.0, %v1147_v7  ;;  %v437_v0 = vadd.f32 %v1033_v54, %v1032_v53  ;;  %v1381_v27 = vld [vmem:[%s2256_s0 + $0x140] sm:$0xff]  ;;  %v1386_v28 = vld [vmem:[%s2256_s0 + $0x148] sm:$0xff]  ;;  %v1396_v30 = vld [vmem:[%s2256_s0 + $0x130] sm:$0xff] }
  0x10   :  { %152 = vst [vmem:[%s2257_s1 + $0x50] sm:$0xff] %v120_v55  ;;  %vm196_vm2 = vcmp.gt.f32.partialorder %v68_v46, 0.0  ;;  %v124_v1 = vpack.c.bf16 %v75_v63, %v74_v62  ;;  %vm197_vm3 = vcmp.gt.f32.partialorder %v69_v47, 0.0  ;;  %v123_v4 = vpack.c.bf16 %v1303_v3, %v1298_v2  ;;  %v1401_v31 = vld [vmem:[%s2256_s0 + $0x138] sm:$0xff]  ;;  %v1414_v35 = vld [vmem:[%s2256_s0 + $0x120] sm:$0xff]  ;;  %v1419_v36 = vld [vmem:[%s2256_s0 + $0x128] sm:$0xff] }
  0x11   :  { %531 = vadd.xlane.f32.xlu0 %v431_v44  ;;  %151 = vst [vmem:[%s2257_s1 + $0x48] sm:$0xff] %v119_v58  ;;  %v436_v5 = vadd.f32 %v1031_v61, %v1030_v60  ;;  %vm194_vm4 = vcmp.gt.f32.partialorder %v66_v49, 0.0  ;;  %vm195_vm5 = vcmp.gt.f32.partialorder %v67_v52, 0.0  ;;  %v1040_v9 = vsel %vm196_vm2, 1.0, %v1147_v7  ;;  %v1432_v39 = vld [vmem:[%s2256_s0 + $0x170] sm:$0xff]  ;;  %v1437_v40 = vld [vmem:[%s2256_s0 + $0x178] sm:$0xff] }
  0x12   :  { %156 = vst [vmem:[%s2257_s1 + $0x70] sm:$0xff] %v124_v1  ;;  %v122_v10 = vpack.c.bf16 %v1318_v8, %v1313_v6  ;;  %v1041_v13 = vsel %vm197_vm3, 1.0, %v1147_v7  ;;  %vm192_vm6 = vcmp.gt.f32.partialorder %v64_v56, 0.0  ;;  %vm193_vm7 = vcmp.gt.f32.partialorder %v65_v57, 0.0  ;;  %v1453_v44 = vld [vmem:[%s2256_s0 + $0x160] sm:$0xff]  ;;  %v1458_v45 = vld [vmem:[%s2256_s0 + $0x168] sm:$0xff] }
  0x13   :  { %155 = vst [vmem:[%s2257_s1 + $0x68] sm:$0xff] %v123_v4  ;;  %v127_v14 = vpack.c.bf16 %v1334_v12, %v1329_v11  ;;  %v1038_v15 = vsel %vm194_vm4, 1.0, %v1147_v7  ;;  %v1039_v16 = vsel %vm195_vm5, 1.0, %v1147_v7  ;;  %v126_v19 = vpack.c.bf16 %v1354_v18, %v1349_v17  ;;  %v1470_v50 = vld [vmem:[%s2256_s0 + $0x150] sm:$0xff]  ;;  %v1475_v51 = vld [vmem:[%s2256_s0 + $0x158] sm:$0xff]  ;;  %v1487_v54 = vld [vmem:[%s2256_s0 + $0x1a0] sm:$0xff] }
  0x14   :  { %154 = vst [vmem:[%s2257_s1 + $0x60] sm:$0xff] %v122_v10  ;;  %v441_v22 = vadd.f32 %v1041_v13, %v1040_v9  ;;  %v1036_v23 = vsel %vm192_vm6, 1.0, %v1147_v7  ;;  %v1037_v24 = vsel %vm193_vm7, 1.0, %v1147_v7  ;;  %v125_v25 = vpack.c.bf16 %v1369_v21, %v1364_v20  ;;  %v1492_v55 = vld [vmem:[%s2256_s0 + $0x1a8] sm:$0xff]  ;;  %v1504_v58 = vld [vmem:[%s2256_s0 + $0x190] sm:$0xff]  ;;  %v1568_v13 = vld [vmem:[%s2256_s0 + $0x1c0] sm:$0xff] }
  0x15   :  { %159 = vst [vmem:[%s2257_s1 + $0x88] sm:$0xff] %v127_v14  ;;  %v440_v26 = vadd.f32 %v1039_v16, %v1038_v15  ;;  %vm202_vm8 = vcmp.gt.f32.partialorder %v74_v62, 0.0  ;;  %vm203_vm9 = vcmp.gt.f32.partialorder %v75_v63, 0.0  ;;  %v130_v29 = vpack.c.bf16 %v1386_v28, %v1381_v27  ;;  %v1523_v63 = vld [vmem:[%s2256_s0 + $0x180] sm:$0xff]  ;;  %v1544_v4 = vld [vmem:[%s2256_s0 + $0x1d0] sm:$0xff]  ;;  %v1573_v14 = vld [vmem:[%s2256_s0 + $0x1c8] sm:$0xff] }
  0x16   :  { %545 = vadd.xlane.f32.xlu2 %v438_v59  ;;  %158 = vst [vmem:[%s2257_s1 + $0x80] sm:$0xff] %v126_v19  ;;  %v439_v32 = vadd.f32 %v1037_v24, %v1036_v23  ;;  %vm200_vm10 = vcmp.gt.f32.partialorder %v1298_v2, 0.0  ;;  %vm201_vm11 = vcmp.gt.f32.partialorder %v1303_v3, 0.0  ;;  %v129_v33 = vpack.c.bf16 %v1401_v31, %v1396_v30  ;;  %v1509_v59 = vld [vmem:[%s2256_s0 + $0x198] sm:$0xff]  ;;  %v1604_v23 = vld [vmem:[%s2256_s0 + $0x1f0] sm:$0xff] }
  0x17   :  { %543 = vadd.xlane.f32.xlu1 %v437_v0  ;;  %157 = vst [vmem:[%s2257_s1 + $0x78] sm:$0xff] %v125_v25  ;;  %v1046_v34 = vsel %vm202_vm8, 1.0, %v1147_v7  ;;  %v1047_v37 = vsel %vm203_vm9, 1.0, %v1147_v7  ;;  %vm198_vm12 = vcmp.gt.f32.partialorder %v1313_v6, 0.0  ;;  %vm199_vm13 = vcmp.gt.f32.partialorder %v1318_v8, 0.0  ;;  %v1528_v0 = vld [vmem:[%s2256_s0 + $0x188] sm:$0xff] }
  0x18   :  { %162 = vst [vmem:[%s2257_s1 + $0xa0] sm:$0xff] %v130_v29  ;;  %v128_v38 = vpack.c.bf16 %v1419_v36, %v1414_v35  ;;  %v1044_v41 = vsel %vm200_vm10, 1.0, %v1147_v7  ;;  %v1045_v42 = vsel %vm201_vm11, 1.0, %v1147_v7  ;;  %v133_v43 = vpack.c.bf16 %v1437_v40, %v1432_v39  ;;  %v1609_v24 = vld [vmem:[%s2256_s0 + $0x1f8] sm:$0xff] }
  0x19   :  { %541 = vadd.xlane.f32.xlu0 %v436_v5  ;;  %161 = vst [vmem:[%s2257_s1 + $0x98] sm:$0xff] %v129_v33  ;;  %v444_v46 = vadd.f32 %v1047_v37, %v1046_v34  ;;  %v1042_v47 = vsel %vm198_vm12, 1.0, %v1147_v7  ;;  %v1043_v48 = vsel %vm199_vm13, 1.0, %v1147_v7  ;;  %v132_v49 = vpack.c.bf16 %v1458_v45, %v1453_v44  ;;  %v1549_v5 = vld [vmem:[%s2256_s0 + $0x1d8] sm:$0xff]  ;;  %v107_v33 = vld [vmem:[%s2256_s0 + $0x1e8] sm:$0xff] }
  0x1a   :  { %160 = vst [vmem:[%s2257_s1 + $0x90] sm:$0xff] %v128_v38  ;;  %v443_v52 = vadd.f32 %v1045_v42, %v1044_v41  ;;  %vm208_vm14 = vcmp.gt.f32.partialorder %v1329_v11, 0.0  ;;  %v131_v53 = vpack.c.bf16 %v1475_v51, %v1470_v50  ;;  %vm209_vm15 = vcmp.gt.f32.partialorder %v1334_v12, 0.0 }
  0x1b   :  { %165 = vst [vmem:[%s2257_s1 + $0xb8] sm:$0xff] %v133_v43  ;;  %v442_v56 = vadd.f32 %v1043_v48, %v1042_v47  ;;  %vm206_vm0 = vcmp.gt.f32.partialorder %v1349_v17, 0.0  ;;  %vm207_vm1 = vcmp.gt.f32.partialorder %v1354_v18, 0.0  ;;  %v136_v57 = vpack.c.bf16 %v1492_v55, %v1487_v54  ;;  %v1581_v17 = vld [vmem:[%s2256_s0 + $0x1b0] sm:$0xff]  ;;  %v1586_v18 = vld [vmem:[%s2256_s0 + $0x1b8] sm:$0xff] }
  0x1c   :  { %164 = vst [vmem:[%s2257_s1 + $0xb0] sm:$0xff] %v132_v49  ;;  %v1052_v60 = vsel %vm208_vm14, 1.0, %v1147_v7  ;;  %v135_v61 = vpack.c.bf16 %v1509_v59, %v1504_v58  ;;  %v1053_v62 = vsel %vm209_vm15, 1.0, %v1147_v7  ;;  %vm204_vm2 = vcmp.gt.f32.partialorder %v1364_v20, 0.0 }
  0x1d   :  { %163 = vst [vmem:[%s2257_s1 + $0xa8] sm:$0xff] %v131_v53  ;;  %vm205_vm3 = vcmp.gt.f32.partialorder %v1369_v21, 0.0  ;;  %v1050_v1 = vsel %vm206_vm0, 1.0, %v1147_v7  ;;  %v1051_v2 = vsel %vm207_vm1, 1.0, %v1147_v7  ;;  %v134_v3 = vpack.c.bf16 %v1528_v0, %v1523_v63 }
  0x1e   :  { %551 = vadd.xlane.f32.xlu2 %v441_v22  ;;  %168 = vst [vmem:[%s2257_s1 + $0xd0] sm:$0xff] %v136_v57  ;;  %v447_v6 = vadd.f32 %v1053_v62, %v1052_v60  ;;  %v1048_v8 = vsel %vm204_vm2, 1.0, %v1147_v7  ;;  %v1049_v9 = vsel %vm205_vm3, 1.0, %v1147_v7  ;;  %v139_v10 = vpack.c.bf16 %v1549_v5, %v1544_v4 }
  0x1f   :  { %549 = vadd.xlane.f32.xlu1 %v440_v26  ;;  %167 = vst [vmem:[%s2257_s1 + $0xc8] sm:$0xff] %v135_v61  ;;  %v446_v11 = vadd.f32 %v1051_v2, %v1050_v1  ;;  %vm214_vm4 = vcmp.gt.f32.partialorder %v1381_v27, 0.0  ;;  %vm215_vm5 = vcmp.gt.f32.partialorder %v1386_v28, 0.0  ;;  %v445_v12 = vadd.f32 %v1049_v9, %v1048_v8 }
  0x20   :  { %166 = vst [vmem:[%s2257_s1 + $0xc0] sm:$0xff] %v134_v3  ;;  %vm212_vm6 = vcmp.gt.f32.partialorder %v1396_v30, 0.0  ;;  %vm213_vm7 = vcmp.gt.f32.partialorder %v1401_v31, 0.0  ;;  %v1058_v15 = vsel %vm214_vm4, 1.0, %v1147_v7  ;;  %v138_v16 = vpack.c.bf16 %v1573_v14, %v1568_v13 }
  0x21   :  { %547 = vadd.xlane.f32.xlu0 %v439_v32  ;;  %171 = vst [vmem:[%s2257_s1 + $0xe8] sm:$0xff] %v139_v10  ;;  %v1059_v19 = vsel %vm215_vm5, 1.0, %v1147_v7  ;;  %vm210_vm8 = vcmp.gt.f32.partialorder %v1414_v35, 0.0  ;;  %vm211_vm9 = vcmp.gt.f32.partialorder %v1419_v36, 0.0  ;;  %v137_v20 = vpack.c.bf16 %v1586_v18, %v1581_v17  ;;  %v106_v32 = vld [vmem:[%s2256_s0 + $0x1e0] sm:$0xff] }
  0x22   :  { %v1056_v21 = vsel %vm212_vm6, 1.0, %v1147_v7  ;;  %v1057_v22 = vsel %vm213_vm7, 1.0, %v1147_v7  ;;  %170 = vst [vmem:[%s2257_s1 + $0xe0] sm:$0xff] %v138_v16  ;;  %v450_v25 = vadd.f32 %v1059_v19, %v1058_v15  ;;  %v1054_v26 = vsel %vm210_vm8, 1.0, %v1147_v7 }
  0x23   :  { %169 = vst [vmem:[%s2257_s1 + $0xd8] sm:$0xff] %v137_v20  ;;  %v1055_v27 = vsel %vm211_vm9, 1.0, %v1147_v7  ;;  %v141_v28 = vpack.c.bf16 %v1609_v24, %v1604_v23  ;;  %v449_v29 = vadd.f32 %v1057_v22, %v1056_v21  ;;  %vm220_vm10 = vcmp.gt.f32.partialorder %v1432_v39, 0.0 }
  0x24   :  { %vm221_vm11 = vcmp.gt.f32.partialorder %v1437_v40, 0.0  ;;  %v448_v30 = vadd.f32 %v1055_v27, %v1054_v26  ;;  %vm218_vm12 = vcmp.gt.f32.partialorder %v1453_v44, 0.0  ;;  %vm219_vm13 = vcmp.gt.f32.partialorder %v1458_v45, 0.0 }
  0x25   :  { %173 = vst [vmem:[%s2257_s1 + $0xf8] sm:$0xff] %v141_v28  ;;  %v1064_v31 = vsel %vm220_vm10, 1.0, %v1147_v7  ;;  %v1065_v34 = vsel %vm221_vm11, 1.0, %v1147_v7  ;;  %vm216_vm14 = vcmp.gt.f32.partialorder %v1470_v50, 0.0  ;;  %vm217_vm15 = vcmp.gt.f32.partialorder %v1475_v51, 0.0 }
  0x26   :  { %557 = vadd.xlane.f32.xlu2 %v444_v46  ;;  %v140_v35 = vpack.c.bf16 %v107_v33, %v106_v32  ;;  %v1062_v36 = vsel %vm218_vm12, 1.0, %v1147_v7  ;;  %v1063_v37 = vsel %vm219_vm13, 1.0, %v1147_v7  ;;  %v453_v38 = vadd.f32 %v1065_v34, %v1064_v31 }
  0x27   :  { %555 = vadd.xlane.f32.xlu1 %v443_v52  ;;  %v1060_v39 = vsel %vm216_vm14, 1.0, %v1147_v7  ;;  %v1061_v40 = vsel %vm217_vm15, 1.0, %v1147_v7  ;;  %v452_v41 = vadd.f32 %v1063_v37, %v1062_v36  ;;  %vm226_vm0 = vcmp.gt.f32.partialorder %v1487_v54, 0.0 }
  0x28   :  { %172 = vst [vmem:[%s2257_s1 + $0xf0] sm:$0xff] %v140_v35  ;;  %vm227_vm1 = vcmp.gt.f32.partialorder %v1492_v55, 0.0  ;;  %v451_v42 = vadd.f32 %v1061_v40, %v1060_v39  ;;  %vm224_vm2 = vcmp.gt.f32.partialorder %v1504_v58, 0.0  ;;  %vm225_vm3 = vcmp.gt.f32.partialorder %v1509_v59, 0.0 }
  0x29   :  { %553 = vadd.xlane.f32.xlu0 %v442_v56  ;;  %v1070_v43 = vsel %vm226_vm0, 1.0, %v1147_v7  ;;  %v1071_v44 = vsel %vm227_vm1, 1.0, %v1147_v7  ;;  %vm222_vm4 = vcmp.gt.f32.partialorder %v1523_v63, 0.0  ;;  %vm223_vm5 = vcmp.gt.f32.partialorder %v1528_v0, 0.0 }
  0x2a   :  { %v1068_v45 = vsel %vm224_vm2, 1.0, %v1147_v7  ;;  %v1069_v46 = vsel %vm225_vm3, 1.0, %v1147_v7  ;;  %v456_v47 = vadd.f32 %v1071_v44, %v1070_v43  ;;  %v1066_v48 = vsel %vm222_vm4, 1.0, %v1147_v7 }
  0x2b   :  { %v1067_v49 = vsel %vm223_vm5, 1.0, %v1147_v7  ;;  %v455_v50 = vadd.f32 %v1069_v46, %v1068_v45  ;;  %vm232_vm6 = vcmp.gt.f32.partialorder %v1544_v4, 0.0  ;;  %vm233_vm7 = vcmp.gt.f32.partialorder %v1549_v5, 0.0 }
  0x2c   :  { %v454_v51 = vadd.f32 %v1067_v49, %v1066_v48  ;;  %vm230_vm8 = vcmp.gt.f32.partialorder %v1568_v13, 0.0  ;;  %vm231_vm9 = vcmp.gt.f32.partialorder %v1573_v14, 0.0  ;;  %v1076_v52 = vsel %vm232_vm6, 1.0, %v1147_v7 }
  0x2d   :  { %v1077_v53 = vsel %vm233_vm7, 1.0, %v1147_v7  ;;  %vm228_vm10 = vcmp.gt.f32.partialorder %v1581_v17, 0.0  ;;  %vm229_vm11 = vcmp.gt.f32.partialorder %v1586_v18, 0.0  ;;  %v1074_v54 = vsel %vm230_vm8, 1.0, %v1147_v7 }
  0x2e   :  { %563 = vadd.xlane.f32.xlu2 %v447_v6  ;;  %v1075_v55 = vsel %vm231_vm9, 1.0, %v1147_v7  ;;  %v459_v56 = vadd.f32 %v1077_v53, %v1076_v52  ;;  %v1072_v57 = vsel %vm228_vm10, 1.0, %v1147_v7  ;;  %v1073_v58 = vsel %vm229_vm11, 1.0, %v1147_v7 }
  0x2f   :  { %561 = vadd.xlane.f32.xlu1 %v446_v11  ;;  %v458_v59 = vadd.f32 %v1075_v55, %v1074_v54  ;;  %v457_v60 = vadd.f32 %v1073_v58, %v1072_v57  ;;  %vm236_vm12 = vcmp.gt.f32.partialorder %v1604_v23, 0.0  ;;  %vm237_vm13 = vcmp.gt.f32.partialorder %v1609_v24, 0.0 }
  0x30   :  { %vm234_vm14 = vcmp.gt.f32.partialorder %v106_v32, 0.0  ;;  %vm235_vm15 = vcmp.gt.f32.partialorder %v107_v33, 0.0  ;;  %v1080_v61 = vsel %vm236_vm12, 1.0, %v1147_v7  ;;  %v1081_v62 = vsel %vm237_vm13, 1.0, %v1147_v7 }
  0x31   :  { %559 = vadd.xlane.f32.xlu0 %v445_v12  ;;  %v1078_v63 = vsel %vm234_vm14, 1.0, %v1147_v7  ;;  %v1079_v0 = vsel %vm235_vm15, 1.0, %v1147_v7  ;;  %v461_v1 = vadd.f32 %v1081_v62, %v1080_v61  ;;  %vm977_vm0 = vcmask 7168  }
  0x32   :  { %v460_v2 = vadd.f32 %v1079_v0, %v1078_v63 }
  0x36   :  { %569 = vadd.xlane.f32.xlu2 %v450_v25 }
  0x37   :  { %567 = vadd.xlane.f32.xlu1 %v449_v29 }
  0x39   :  { %565 = vadd.xlane.f32.xlu0 %v448_v30 }
  0x3e   :  { %575 = vadd.xlane.f32.xlu2 %v453_v38 }
  0x3f   :  { %573 = vadd.xlane.f32.xlu1 %v452_v41 }
  0x41   :  { %571 = vadd.xlane.f32.xlu0 %v451_v42 }
  0x46   :  { %581 = vadd.xlane.f32.xlu2 %v456_v47 }
  0x47   :  { %579 = vadd.xlane.f32.xlu1 %v455_v50 }
  0x49   :  { %577 = vadd.xlane.f32.xlu0 %v454_v51 }
  0x4e   :  { %587 = vadd.xlane.f32.xlu2 %v459_v56 }
  0x4f   :  { %585 = vadd.xlane.f32.xlu1 %v458_v59 }
  0x51   :  { %583 = vadd.xlane.f32.xlu0 %v457_v60 }
  0x57   :  { %591 = vadd.xlane.f32.xlu1 %v461_v1 }
  0x59   :  { %589 = vadd.xlane.f32.xlu0 %v460_v2 }
  0x79   :  { %v538_v3 = vpop.xlane.xlu2 %537 }
  0x7a   :  { %1083 = vrsqrt.f32 %v538_v3  ;;  %v534_v4 = vpop.xlane.xlu1 %533  ;;  %vm671_vm1 = vweird.f32 %v538_v3  ;;  %vm597_vm3 = vcmp.gt.f32.partialorder %v538_v3, 0.0 }
  0x7b   :  { %1085 = vrsqrt.f32 %v534_v4  ;;  %vm595_vm5 = vcmp.gt.f32.partialorder %v534_v4, 0.0  ;;  %vm651_vm6 = vweird.f32 %v534_v4 }
  0x7c   :  { %v1669_v5 = vpop.xlane.xlu0 %529 }
  0x7d   :  { %1087 = vrsqrt.f32 %v1669_v5  ;;  %vm631_vm10 = vweird.f32 %v1669_v5  ;;  %vm593_vm11 = vcmp.gt.f32.partialorder %v1669_v5, 0.0 }
  0x80   :  { %v1084_v6 = vpop.eup %1083 }
  0x81   :  { %v1086_v8 = vpop.eup %1085  ;;  %v666_v9 = vmul.f32 %v1084_v6, %v538_v3  ;;  %v1672_v10 = vpop.xlane.xlu2 %539  ;;  %vm672_vm2 = vweird.f32 %v1084_v6 }
  0x82   :  { %v646_v11 = vmul.f32 %v1086_v8, %v534_v4  ;;  %1089 = vrsqrt.f32 %v1672_v10  ;;  %v1675_v7 = vpop.xlane.xlu1 %535  ;;  %vm652_vm4 = vweird.f32 %v1086_v8  ;;  %vm673_vm7 = vmor %vm671_vm1, %vm672_vm2  ;;  %vm681_vm13 = vweird.f32 %v1672_v10 }
  0x83   :  { %v1088_v12 = vpop.eup %1087  ;;  %v667_v13 = vmul.f32 %v1084_v6, %v666_v9  ;;  %1091 = vrsqrt.f32 %v1675_v7  ;;  %vm653_vm9 = vmor %vm651_vm6, %vm652_vm4  ;;  %vm598_vm1 = vcmp.gt.f32.partialorder %v1672_v10, 0.0  ;;  %vm596_vm6 = vcmp.gt.f32.partialorder %v1675_v7, 0.0 }
  0x84   :  { %v647_v14 = vmul.f32 %v1086_v8, %v646_v11  ;;  %v626_v15 = vmul.f32 %v1088_v12, %v1669_v5  ;;  %v1679_v16 = vpop.xlane.xlu0 %531  ;;  %vm632_vm8 = vweird.f32 %v1088_v12 }
  0x85   :  { %v668_v17 = vmul.f32 0.5, %v667_v13  ;;  %1093 = vrsqrt.f32 %v1679_v16  ;;  %vm633_vm12 = vmor %vm631_vm10, %vm632_vm8  ;;  %vm594_vm8 = vcmp.gt.f32.partialorder %v1679_v16, 0.0 }
  0x86   :  { %v648_v18 = vmul.f32 0.5, %v647_v14  ;;  %v627_v19 = vmul.f32 %v1088_v12, %v626_v15 }
  0x87   :  { %v669_v20 = vsub.f32 1.5, %v668_v17 }
  0x88   :  { %v1682_v21 = vpop.eup %1089  ;;  %v649_v22 = vsub.f32 1.5, %v648_v18  ;;  %v628_v23 = vmul.f32 0.5, %v627_v19 }
  0x89   :  { %v1684_v24 = vpop.eup %1091  ;;  %v670_v25 = vmul.f32 %v1084_v6, %v669_v20  ;;  %v676_v26 = vmul.f32 %v1682_v21, %v1672_v10  ;;  %v1688_v27 = vpop.xlane.xlu2 %545  ;;  %vm682_vm14 = vweird.f32 %v1682_v21 }
  0x8a   :  { %v650_v28 = vmul.f32 %v1086_v8, %v649_v22  ;;  %v629_v29 = vsub.f32 1.5, %v628_v23  ;;  %v656_v30 = vmul.f32 %v1684_v24, %v1675_v7  ;;  %v1692_v31 = vpop.xlane.xlu1 %543  ;;  %1095 = vrsqrt.f32 %v1688_v27  ;;  %vm683_vm2 = vmor %vm681_vm13, %vm682_vm14 }
  0x8b   :  { %v1694_v32 = vpop.eup %1093  ;;  %v674_v33 = vsel %vm673_vm7, %v1084_v6, %v670_v25  ;;  %v677_v34 = vmul.f32 %v1682_v21, %v676_v26  ;;  %1097 = vrsqrt.f32 %v1692_v31  ;;  %vm662_vm15 = vweird.f32 %v1684_v24 }
  0x8c   :  { %v949_v35 = vsel %vm597_vm3, %v674_v33, 0.0  ;;  %v654_v36 = vsel %vm653_vm9, %v1086_v8, %v650_v28  ;;  %v630_v37 = vmul.f32 %v1088_v12, %v629_v29  ;;  %v657_v38 = vmul.f32 %v1684_v24, %v656_v30  ;;  %v1702_v39 = vpop.xlane.xlu0 %541 }
  0x8d   :  { %982 = vst.msk [vmem:[%s2258_s2 + $0x20] sm:$0xff] %vm977_vm0, %v949_v35  ;;  %v947_v40 = vsel %vm595_vm5, %v654_v36, 0.0  ;;  %v678_v41 = vmul.f32 0.5, %v677_v34  ;;  %v636_v42 = vmul.f32 %v1694_v32, %v1679_v16  ;;  %1099 = vrsqrt.f32 %v1702_v39 }
  0x8e   :  { %980 = vst.msk [vmem:[%s2258_s2 + $0x10] sm:$0xff] %vm977_vm0, %v947_v40  ;;  %v634_v43 = vsel %vm633_vm12, %v1088_v12, %v630_v37  ;;  %v658_v44 = vmul.f32 0.5, %v657_v38  ;;  %vm661_vm3 = vweird.f32 %v1675_v7  ;;  %vm642_vm5 = vweird.f32 %v1694_v32 }
  0x8f   :  { %v945_v45 = vsel %vm593_vm11, %v634_v43, 0.0  ;;  %v679_v46 = vsub.f32 1.5, %v678_v41  ;;  %v637_v47 = vmul.f32 %v1694_v32, %v636_v42  ;;  %vm663_vm4 = vmor %vm661_vm3, %vm662_vm15  ;;  %vm641_vm7 = vweird.f32 %v1679_v16 }
  0x90   :  { %978 = vst.msk [vmem:[%s2258_s2] sm:$0xff] %vm977_vm0, %v945_v45  ;;  %v659_v48 = vsub.f32 1.5, %v658_v44  ;;  %v1727_v49 = vpop.eup %1095  ;;  %vm643_vm9 = vmor %vm641_vm7, %vm642_vm5  ;;  %vm711_vm10 = vweird.f32 %v1688_v27  ;;  %vm601_vm12 = vcmp.gt.f32.partialorder %v1688_v27, 0.0  ;;  %vm600_vm13 = vcmp.gt.f32.partialorder %v1692_v31, 0.0 }
  0x91   :  { %v680_v50 = vmul.f32 %v1682_v21, %v679_v46  ;;  %v638_v51 = vmul.f32 0.5, %v637_v47  ;;  %v1730_v52 = vpop.xlane.xlu2 %551  ;;  %v706_v54 = vmul.f32 %v1727_v49, %v1688_v27  ;;  %v1751_v62 = vpop.eup %1097  ;;  %vm712_vm11 = vweird.f32 %v1727_v49 }
  0x92   :  { %v660_v53 = vmul.f32 %v1684_v24, %v659_v48  ;;  %v1741_v55 = vpop.xlane.xlu1 %549  ;;  %1101 = vrsqrt.f32 %v1730_v52  ;;  %v696_v3 = vmul.f32 %v1751_v62, %v1692_v31  ;;  %vm701_vm14 = vweird.f32 %v1692_v31  ;;  %vm713_vm15 = vmor %vm711_vm10, %vm712_vm11 }
  0x93   :  { %v684_v56 = vsel %vm683_vm2, %v1682_v21, %v680_v50  ;;  %v639_v57 = vsub.f32 1.5, %v638_v51  ;;  %v707_v60 = vmul.f32 %v1727_v49, %v706_v54  ;;  %1103 = vrsqrt.f32 %v1741_v55  ;;  %v1760_v1 = vpop.eup %1099 }
  0x94   :  { %v950_v58 = vsel %vm598_vm1, %v684_v56, 0.0  ;;  %v664_v59 = vsel %vm663_vm4, %v1684_v24, %v660_v53  ;;  %v1749_v61 = vpop.xlane.xlu0 %547  ;;  %v686_v5 = vmul.f32 %v1760_v1, %v1702_v39  ;;  %v697_v9 = vmul.f32 %v1751_v62, %v696_v3 }
  0x95   :  { %983 = vst.msk [vmem:[%s2258_s2 + $0x28] sm:$0xff] %vm977_vm0, %v950_v58  ;;  %v948_v63 = vsel %vm596_vm6, %v664_v59, 0.0  ;;  %v640_v0 = vmul.f32 %v1694_v32, %v639_v57  ;;  %v708_v2 = vmul.f32 0.5, %v707_v60  ;;  %1105 = vrsqrt.f32 %v1749_v61 }
  0x96   :  { %981 = vst.msk [vmem:[%s2258_s2 + $0x18] sm:$0xff] %vm977_vm0, %v948_v63  ;;  %v687_v11 = vmul.f32 %v1760_v1, %v686_v5  ;;  %v698_v13 = vmul.f32 0.5, %v697_v9  ;;  %vm702_vm1 = vweird.f32 %v1751_v62  ;;  %vm599_vm2 = vcmp.gt.f32.partialorder %v1702_v39, 0.0 }
  0x97   :  { %v644_v4 = vsel %vm643_vm9, %v1694_v32, %v640_v0  ;;  %v709_v8 = vsub.f32 1.5, %v708_v2  ;;  %vm691_vm3 = vweird.f32 %v1702_v39  ;;  %vm692_vm4 = vweird.f32 %v1760_v1  ;;  %vm703_vm5 = vmor %vm701_vm14, %vm702_vm1 }
  0x98   :  { %v946_v6 = vsel %vm594_vm8, %v644_v4, 0.0  ;;  %v1778_v10 = vpop.eup %1101  ;;  %v688_v17 = vmul.f32 0.5, %v687_v11  ;;  %v699_v19 = vsub.f32 1.5, %v698_v13  ;;  %vm741_vm6 = vweird.f32 %v1730_v52  ;;  %vm693_vm8 = vmor %vm691_vm3, %vm692_vm4 }
  0x99   :  { %979 = vst.msk [vmem:[%s2258_s2 + $0x8] sm:$0xff] %vm977_vm0, %v946_v6  ;;  %v1787_v7 = vpop.xlane.xlu2 %557  ;;  %v710_v12 = vmul.f32 %v1727_v49, %v709_v8  ;;  %v736_v14 = vmul.f32 %v1778_v10, %v1730_v52  ;;  %v1795_v16 = vpop.eup %1103  ;;  %vm742_vm7 = vweird.f32 %v1778_v10  ;;  %vm604_vm10 = vcmp.gt.f32.partialorder %v1730_v52, 0.0 }
  0x9a   :  { %v1793_v15 = vpop.xlane.xlu1 %555  ;;  %1107 = vrsqrt.f32 %v1787_v7  ;;  %v726_v21 = vmul.f32 %v1795_v16, %v1741_v55  ;;  %v689_v25 = vsub.f32 1.5, %v688_v17  ;;  %v700_v26 = vmul.f32 %v1751_v62, %v699_v19  ;;  %vm743_vm11 = vmor %vm741_vm6, %vm742_vm7 }
  0x9b   :  { %v714_v18 = vsel %vm713_vm15, %v1727_v49, %v710_v12  ;;  %v737_v20 = vmul.f32 %v1778_v10, %v736_v14  ;;  %v1808_v23 = vpop.eup %1105  ;;  %1109 = vrsqrt.f32 %v1793_v15  ;;  %vm732_vm9 = vweird.f32 %v1795_v16 }
  0x9c   :  { %v1806_v22 = vpop.xlane.xlu0 %553  ;;  %v953_v24 = vsel %vm601_vm12, %v714_v18, 0.0  ;;  %v727_v29 = vmul.f32 %v1795_v16, %v726_v21  ;;  %v716_v30 = vmul.f32 %v1808_v23, %v1749_v61  ;;  %v690_v27 = vmul.f32 %v1760_v1, %v689_v25 }
  0x9d   :  { %986 = vst.msk [vmem:[%s2258_s2 + $0x40] sm:$0xff] %vm977_vm0, %v953_v24  ;;  %v738_v28 = vmul.f32 0.5, %v737_v20  ;;  %v704_v32 = vsel %vm703_vm5, %v1751_v62, %v700_v26  ;;  %1111 = vrsqrt.f32 %v1806_v22  ;;  %vm731_vm12 = vweird.f32 %v1741_v55 }
  0x9e   :  { %v728_v34 = vmul.f32 0.5, %v727_v29  ;;  %v717_v35 = vmul.f32 %v1808_v23, %v716_v30  ;;  %v952_v37 = vsel %vm600_vm13, %v704_v32, 0.0  ;;  %v694_v38 = vsel %vm693_vm8, %v1760_v1, %v690_v27  ;;  %vm733_vm15 = vmor %vm731_vm12, %vm732_vm9 }
  0x9f   :  { %v739_v33 = vsub.f32 1.5, %v738_v28  ;;  %985 = vst.msk [vmem:[%s2258_s2 + $0x38] sm:$0xff] %vm977_vm0, %v952_v37  ;;  %v951_v41 = vsel %vm599_vm2, %v694_v38, 0.0  ;;  %vm722_vm13 = vweird.f32 %v1808_v23  ;;  %vm603_vm14 = vcmp.gt.f32.partialorder %v1741_v55, 0.0 }
  0xa0   :  { %v1832_v36 = vpop.eup %1107  ;;  %v729_v31 = vsub.f32 1.5, %v728_v34  ;;  %v718_v43 = vmul.f32 0.5, %v717_v35  ;;  %984 = vst.msk [vmem:[%s2258_s2 + $0x30] sm:$0xff] %vm977_vm0, %v951_v41  ;;  %vm602_vm1 = vcmp.gt.f32.partialorder %v1749_v61, 0.0  ;;  %vm721_vm2 = vweird.f32 %v1749_v61 }
  0xa1   :  { %v1839_v40 = vpop.xlane.xlu2 %563  ;;  %v740_v42 = vmul.f32 %v1778_v10, %v739_v33  ;;  %v766_v39 = vmul.f32 %v1832_v36, %v1787_v7  ;;  %v1868_v49 = vpop.eup %1109  ;;  %vm723_vm3 = vmor %vm721_vm2, %vm722_vm13  ;;  %vm607_vm4 = vcmp.gt.f32.partialorder %v1787_v7, 0.0  ;;  %vm771_vm5 = vweird.f32 %v1787_v7 }
  0xa2   :  { %v1848_v44 = vpop.xlane.xlu1 %561  ;;  %v730_v46 = vmul.f32 %v1795_v16, %v729_v31  ;;  %v719_v47 = vsub.f32 1.5, %v718_v43  ;;  %1113 = vrsqrt.f32 %v1839_v40  ;;  %v756_v54 = vmul.f32 %v1868_v49, %v1793_v15 }
  0xa3   :  { %v744_v45 = vsel %vm743_vm11, %v1778_v10, %v740_v42  ;;  %v767_v51 = vmul.f32 %v1832_v36, %v766_v39  ;;  %v1884_v55 = vpop.eup %1111  ;;  %1115 = vrsqrt.f32 %v1848_v44  ;;  %vm772_vm6 = vweird.f32 %v1832_v36 }
  0xa4   :  { %v1866_v48 = vpop.xlane.xlu0 %559  ;;  %v956_v50 = vsel %vm604_vm10, %v744_v45, 0.0  ;;  %v734_v52 = vsel %vm733_vm15, %v1795_v16, %v730_v46  ;;  %v720_v53 = vmul.f32 %v1808_v23, %v719_v47  ;;  %v757_v59 = vmul.f32 %v1868_v49, %v756_v54  ;;  %vm773_vm10 = vmor %vm771_vm5, %vm772_vm6 }
  0xa5   :  { %989 = vst.msk [vmem:[%s2258_s2 + $0x58] sm:$0xff] %vm977_vm0, %v956_v50  ;;  %v955_v56 = vsel %vm603_vm14, %v734_v52, 0.0  ;;  %v768_v57 = vmul.f32 0.5, %v767_v51  ;;  %v746_v60 = vmul.f32 %v1884_v55, %v1806_v22  ;;  %1117 = vrsqrt.f32 %v1866_v48 }
  0xa6   :  { %988 = vst.msk [vmem:[%s2258_s2 + $0x50] sm:$0xff] %vm977_vm0, %v955_v56  ;;  %v724_v58 = vsel %vm723_vm3, %v1808_v23, %v720_v53  ;;  %vm606_vm7 = vcmp.gt.f32.partialorder %v1793_v15, 0.0  ;;  %v758_v2 = vmul.f32 0.5, %v757_v59  ;;  %vm761_vm8 = vweird.f32 %v1793_v15 }
  0xa7   :  { %v954_v62 = vsel %vm602_vm1, %v724_v58, 0.0  ;;  %v769_v63 = vsub.f32 1.5, %v768_v57  ;;  %v747_v61 = vmul.f32 %v1884_v55, %v746_v60  ;;  %vm605_vm9 = vcmp.gt.f32.partialorder %v1806_v22, 0.0 }
  0xa8   :  { %v1905_v1 = vpop.eup %1113  ;;  %987 = vst.msk [vmem:[%s2258_s2 + $0x48] sm:$0xff] %vm977_vm0, %v954_v62  ;;  %v759_v6 = vsub.f32 1.5, %v758_v2  ;;  %vm762_vm11 = vweird.f32 %v1868_v49  ;;  %vm751_vm12 = vweird.f32 %v1806_v22  ;;  %vm752_vm13 = vweird.f32 %v1884_v55 }
  0xa9   :  { %v1903_v0 = vpop.xlane.xlu2 %569  ;;  %v770_v4 = vmul.f32 %v1832_v36, %v769_v63  ;;  %v796_v5 = vmul.f32 %v1905_v1, %v1839_v40  ;;  %v748_v8 = vmul.f32 0.5, %v747_v61  ;;  %v1927_v10 = vpop.eup %1115  ;;  %vm763_vm14 = vmor %vm761_vm8, %vm762_vm11  ;;  %vm610_vm15 = vcmp.gt.f32.partialorder %v1839_v40, 0.0 }
  0xaa   :  { %v1914_v3 = vpop.xlane.xlu1 %567  ;;  %1119 = vrsqrt.f32 %v1903_v0  ;;  %v760_v14 = vmul.f32 %v1868_v49, %v759_v6  ;;  %v786_v17 = vmul.f32 %v1927_v10, %v1848_v44  ;;  %vm801_vm1 = vweird.f32 %v1839_v40  ;;  %vm753_vm2 = vmor %vm751_vm12, %vm752_vm13 }
  0xab   :  { %v774_v11 = vsel %vm773_vm10, %v1832_v36, %v770_v4  ;;  %v797_v12 = vmul.f32 %v1905_v1, %v796_v5  ;;  %1121 = vrsqrt.f32 %v1914_v3  ;;  %v749_v16 = vsub.f32 1.5, %v748_v8  ;;  %v1938_v18 = vpop.eup %1117 }
  0xac   :  { %v1925_v9 = vpop.xlane.xlu0 %565  ;;  %v959_v13 = vsel %vm607_vm4, %v774_v11, 0.0  ;;  %v764_v19 = vsel %vm763_vm14, %v1868_v49, %v760_v14  ;;  %v787_v21 = vmul.f32 %v1927_v10, %v786_v17  ;;  %v776_v23 = vmul.f32 %v1938_v18, %v1866_v48 }
  0xad   :  { %992 = vst.msk [vmem:[%s2258_s2 + $0x70] sm:$0xff] %vm977_vm0, %v959_v13  ;;  %v798_v7 = vmul.f32 0.5, %v797_v12  ;;  %1123 = vrsqrt.f32 %v1925_v9  ;;  %v750_v20 = vmul.f32 %v1884_v55, %v749_v16  ;;  %v958_v25 = vsel %vm606_vm7, %v764_v19, 0.0 }
  0xae   :  { %vm802_vm3 = vweird.f32 %v1905_v1  ;;  %vm609_vm4 = vcmp.gt.f32.partialorder %v1848_v44, 0.0  ;;  %991 = vst.msk [vmem:[%s2258_s2 + $0x68] sm:$0xff] %vm977_vm0, %v958_v25  ;;  %v788_v29 = vmul.f32 0.5, %v787_v21  ;;  %v777_v30 = vmul.f32 %v1938_v18, %v776_v23 }
  0xaf   :  { %v799_v26 = vsub.f32 1.5, %v798_v7  ;;  %v754_v15 = vsel %vm753_vm2, %v1884_v55, %v750_v20  ;;  %vm791_vm5 = vweird.f32 %v1848_v44  ;;  %vm792_vm6 = vweird.f32 %v1927_v10  ;;  %vm803_vm7 = vmor %vm801_vm1, %vm802_vm3 }
  0xb0   :  { %v1956_v24 = vpop.eup %1119  ;;  %v957_v34 = vsel %vm605_vm9, %v754_v15, 0.0  ;;  %v789_v36 = vsub.f32 1.5, %v788_v29  ;;  %v778_v37 = vmul.f32 0.5, %v777_v30  ;;  %vm781_vm8 = vweird.f32 %v1866_v48  ;;  %vm793_vm10 = vmor %vm791_vm5, %vm792_vm6 }
  0xb1   :  { %v1966_v28 = vpop.xlane.xlu2 %575  ;;  %v826_v27 = vmul.f32 %v1956_v24, %v1903_v0  ;;  %v1978_v33 = vpop.eup %1121  ;;  %v800_v35 = vmul.f32 %v1905_v1, %v799_v26  ;;  %990 = vst.msk [vmem:[%s2258_s2 + $0x60] sm:$0xff] %vm977_vm0, %v957_v34  ;;  %vm782_vm9 = vweird.f32 %v1938_v18  ;;  %vm831_vm11 = vweird.f32 %v1903_v0 }
  0xb2   :  { %v1976_v32 = vpop.xlane.xlu1 %573  ;;  %v816_v38 = vmul.f32 %v1978_v33, %v1914_v3  ;;  %1125 = vrsqrt.f32 %v1966_v28  ;;  %v790_v39 = vmul.f32 %v1927_v10, %v789_v36  ;;  %v779_v45 = vsub.f32 1.5, %v778_v37  ;;  %vm783_vm14 = vmor %vm781_vm8, %vm782_vm9 }
  0xb3   :  { %v827_v22 = vmul.f32 %v1956_v24, %v826_v27  ;;  %v1998_v42 = vpop.eup %1123  ;;  %v804_v31 = vsel %vm803_vm7, %v1905_v1, %v800_v35  ;;  %vm832_vm12 = vweird.f32 %v1956_v24  ;;  %1127 = vrsqrt.f32 %v1976_v32 }
  0xb4   :  { %v1996_v41 = vpop.xlane.xlu0 %571  ;;  %v962_v43 = vsel %vm610_vm15, %v804_v31, 0.0  ;;  %v817_v40 = vmul.f32 %v1978_v33, %v816_v38  ;;  %v806_v47 = vmul.f32 %v1998_v42, %v1925_v9  ;;  %v794_v49 = vsel %vm793_vm10, %v1927_v10, %v790_v39  ;;  %vm833_vm1 = vmor %vm831_vm11, %vm832_vm12 }
  0xb5   :  { %v828_v46 = vmul.f32 0.5, %v827_v22  ;;  %995 = vst.msk [vmem:[%s2258_s2 + $0x88] sm:$0xff] %vm977_vm0, %v962_v43  ;;  %v780_v50 = vmul.f32 %v1938_v18, %v779_v45  ;;  %v961_v52 = vsel %vm609_vm4, %v794_v49, 0.0  ;;  %vm608_vm13 = vcmp.gt.f32.partialorder %v1866_v48, 0.0 }
  0xb6   :  { %v818_v53 = vmul.f32 0.5, %v817_v40  ;;  %v807_v54 = vmul.f32 %v1998_v42, %v806_v47  ;;  %994 = vst.msk [vmem:[%s2258_s2 + $0x80] sm:$0xff] %vm977_vm0, %v961_v52  ;;  %vm613_vm15 = vcmp.gt.f32.partialorder %v1903_v0, 0.0  ;;  %1129 = vrsqrt.f32 %v1996_v41 }
  0xb7   :  { %v829_v51 = vsub.f32 1.5, %v828_v46  ;;  %v784_v44 = vsel %vm783_vm14, %v1938_v18, %v780_v50  ;;  %vm822_vm2 = vweird.f32 %v1978_v33  ;;  %vm821_vm3 = vweird.f32 %v1914_v3 }
  0xb8   :  { %v2043_v57 = vpop.eup %1125  ;;  %v960_v58 = vsel %vm608_vm13, %v784_v44, 0.0  ;;  %v819_v59 = vsub.f32 1.5, %v818_v53  ;;  %v808_v60 = vmul.f32 0.5, %v807_v54  ;;  %vm812_vm4 = vweird.f32 %v1998_v42  ;;  %vm823_vm6 = vmor %vm821_vm3, %vm822_vm2 }
  0xb9   :  { %v2031_v55 = vpop.xlane.xlu2 %581  ;;  %v830_v56 = vmul.f32 %v1956_v24, %v829_v51  ;;  %993 = vst.msk [vmem:[%s2258_s2 + $0x78] sm:$0xff] %vm977_vm0, %v960_v58  ;;  %v856_v63 = vmul.f32 %v2043_v57, %v1966_v28  ;;  %v2065_v5 = vpop.eup %1127  ;;  %vm612_vm5 = vcmp.gt.f32.partialorder %v1914_v3, 0.0  ;;  %vm611_vm7 = vcmp.gt.f32.partialorder %v1925_v9, 0.0 }
  0xba   :  { %v2041_v48 = vpop.xlane.xlu1 %579  ;;  %v820_v61 = vmul.f32 %v1978_v33, %v819_v59  ;;  %v809_v4 = vsub.f32 1.5, %v808_v60  ;;  %1131 = vrsqrt.f32 %v2031_v55  ;;  %vm811_vm8 = vweird.f32 %v1925_v9 }
  0xbb   :  { %v834_v62 = vsel %vm833_vm1, %v1956_v24, %v830_v56  ;;  %v857_v0 = vmul.f32 %v2043_v57, %v856_v63  ;;  %1133 = vrsqrt.f32 %v2041_v48  ;;  %v846_v10 = vmul.f32 %v2065_v5, %v1976_v32  ;;  %vm813_vm9 = vmor %vm811_vm8, %vm812_vm4 }
  0xbc   :  { %v2059_v1 = vpop.xlane.xlu0 %577  ;;  %v965_v2 = vsel %vm613_vm15, %v834_v62, 0.0  ;;  %v824_v6 = vsel %vm823_vm6, %v1978_v33, %v820_v61  ;;  %v810_v8 = vmul.f32 %v1998_v42, %v809_v4  ;;  %v2082_v11 = vpop.eup %1129  ;;  %vm616_vm10 = vcmp.gt.f32.partialorder %v1966_v28, 0.0 }
  0xbd   :  { %998 = vst.msk [vmem:[%s2258_s2 + $0xa0] sm:$0xff] %vm977_vm0, %v965_v2  ;;  %v964_v3 = vsel %vm612_vm5, %v824_v6, 0.0  ;;  %v858_v12 = vmul.f32 0.5, %v857_v0  ;;  %vm861_vm11 = vweird.f32 %v1966_v28  ;;  %vm615_vm12 = vcmp.gt.f32.partialorder %v1976_v32, 0.0 }
  0xbe   :  { %997 = vst.msk [vmem:[%s2258_s2 + $0x98] sm:$0xff] %vm977_vm0, %v964_v3  ;;  %v814_v13 = vsel %vm813_vm9, %v1998_v42, %v810_v8  ;;  %v847_v14 = vmul.f32 %v2065_v5, %v846_v10  ;;  %v836_v16 = vmul.f32 %v2082_v11, %v1996_v41  ;;  %vm862_vm13 = vweird.f32 %v2043_v57 }
  0xbf   :  { %v963_v18 = vsel %vm611_vm7, %v814_v13, 0.0  ;;  %v859_v7 = vsub.f32 1.5, %v858_v12  ;;  %1135 = vrsqrt.f32 %v2059_v1  ;;  %vm851_vm14 = vweird.f32 %v1976_v32  ;;  %vm863_vm2 = vmor %vm861_vm11, %vm862_vm13 }
  0xc0   :  { %v2105_v20 = vpop.eup %1131  ;;  %996 = vst.msk [vmem:[%s2258_s2 + $0x90] sm:$0xff] %vm977_vm0, %v963_v18  ;;  %v848_v21 = vmul.f32 0.5, %v847_v14  ;;  %v837_v9 = vmul.f32 %v2082_v11, %v836_v16  ;;  %vm614_vm15 = vcmp.gt.f32.partialorder %v1996_v41, 0.0  ;;  %vm841_vm1 = vweird.f32 %v1996_v41 }
  0xc1   :  { %v2097_v17 = vpop.xlane.xlu2 %587  ;;  %v2114_v23 = vpop.eup %1133  ;;  %v860_v24 = vmul.f32 %v2043_v57, %v859_v7  ;;  %v886_v25 = vmul.f32 %v2105_v20, %v2031_v55  ;;  %vm852_vm3 = vweird.f32 %v2065_v5  ;;  %vm842_vm4 = vweird.f32 %v2082_v11 }
  0xc2   :  { %v2103_v19 = vpop.xlane.xlu1 %585  ;;  %1137 = vrsqrt.f32 %v2097_v17  ;;  %v849_v26 = vsub.f32 1.5, %v848_v21  ;;  %v838_v15 = vmul.f32 0.5, %v837_v9  ;;  %v876_v29 = vmul.f32 %v2114_v23, %v2041_v48  ;;  %vm853_vm6 = vmor %vm851_vm14, %vm852_vm3 }
  0xc3   :  { %v864_v27 = vsel %vm863_vm2, %v2043_v57, %v860_v24  ;;  %vm619_vm5 = vcmp.gt.f32.partialorder %v2031_v55, 0.0  ;;  %v887_v33 = vmul.f32 %v2105_v20, %v886_v25  ;;  %1139 = vrsqrt.f32 %v2103_v19  ;;  %vm843_vm9 = vmor %vm841_vm1, %vm842_vm4 }
  0xc4   :  { %v2126_v30 = vpop.xlane.xlu0 %583  ;;  %v968_v34 = vsel %vm616_vm10, %v864_v27, 0.0  ;;  %v850_v35 = vmul.f32 %v2065_v5, %v849_v26  ;;  %v839_v36 = vsub.f32 1.5, %v838_v15  ;;  %v877_v37 = vmul.f32 %v2114_v23, %v876_v29 }
  0xc5   :  { %v2137_v22 = vpop.eup %1135  ;;  %1001 = vst.msk [vmem:[%s2258_s2 + $0xb8] sm:$0xff] %vm977_vm0, %v968_v34  ;;  %v888_v38 = vmul.f32 0.5, %v887_v33  ;;  %vm891_vm7 = vweird.f32 %v2031_v55  ;;  %vm618_vm8 = vcmp.gt.f32.partialorder %v2041_v48, 0.0  ;;  %1141 = vrsqrt.f32 %v2126_v30 }
  0xc6   :  { %v854_v42 = vsel %vm853_vm6, %v2065_v5, %v850_v35  ;;  %v840_v31 = vmul.f32 %v2082_v11, %v839_v36  ;;  %v878_v43 = vmul.f32 0.5, %v877_v37  ;;  %v866_v39 = vmul.f32 %v2137_v22, %v2059_v1 }
  0xc7   :  { %v967_v45 = vsel %vm615_vm12, %v854_v42, 0.0  ;;  %v889_v46 = vsub.f32 1.5, %v888_v38  ;;  %vm892_vm10 = vweird.f32 %v2105_v20  ;;  %vm882_vm11 = vweird.f32 %v2114_v23 }
  0xc8   :  { %v2150_v28 = vpop.eup %1137  ;;  %1000 = vst.msk [vmem:[%s2258_s2 + $0xb0] sm:$0xff] %vm977_vm0, %v967_v45  ;;  %v844_v47 = vsel %vm843_vm9, %v2082_v11, %v840_v31  ;;  %v879_v32 = vsub.f32 1.5, %v878_v43  ;;  %v867_v49 = vmul.f32 %v2137_v22, %v866_v39  ;;  %vm881_vm12 = vweird.f32 %v2041_v48  ;;  %vm893_vm13 = vmor %vm891_vm7, %vm892_vm10 }
  0xc9   :  { %v916_v40 = vmul.f32 %v2150_v28, %v2097_v17  ;;  %v1140_v51 = vpop.eup %1139  ;;  %v966_v52 = vsel %vm614_vm15, %v844_v47, 0.0  ;;  %v890_v53 = vmul.f32 %v2105_v20, %v889_v46  ;;  %vm921_vm14 = vweird.f32 %v2097_v17  ;;  %vm883_vm15 = vmor %vm881_vm12, %vm882_vm11 }
  0xca   :  { %v2172_v50 = vpop.xlane.xlu1 %591  ;;  %999 = vst.msk [vmem:[%s2258_s2 + $0xa8] sm:$0xff] %vm977_vm0, %v966_v52  ;;  %v880_v44 = vmul.f32 %v2114_v23, %v879_v32  ;;  %v868_v56 = vmul.f32 0.5, %v867_v49  ;;  %v906_v41 = vmul.f32 %v1140_v51, %v2103_v19  ;;  %vm872_vm1 = vweird.f32 %v2137_v22 }
  0xcb   :  { %v917_v54 = vmul.f32 %v2150_v28, %v916_v40  ;;  %v1142_v57 = vpop.eup %1141  ;;  %v894_v58 = vsel %vm893_vm13, %v2105_v20, %v890_v53  ;;  %1143 = vrsqrt.f32 %v2172_v50  ;;  %vm922_vm2 = vweird.f32 %v2150_v28 }
  0xcc   :  { %v971_v60 = vsel %vm619_vm5, %v894_v58, 0.0  ;;  %v884_v62 = vsel %vm883_vm15, %v2114_v23, %v880_v44  ;;  %v869_v63 = vsub.f32 1.5, %v868_v56  ;;  %v907_v2 = vmul.f32 %v1140_v51, %v906_v41  ;;  %v2196_v61 = vpop.xlane.xlu0 %589  ;;  %vm923_vm6 = vmor %vm921_vm14, %vm922_vm2 }
  0xcd   :  { %v918_v59 = vmul.f32 0.5, %v917_v54  ;;  %1004 = vst.msk [vmem:[%s2258_s2 + $0xd0] sm:$0xff] %vm977_vm0, %v971_v60  ;;  %v970_v4 = vsel %vm618_vm8, %v884_v62, 0.0  ;;  %v896_v55 = vmul.f32 %v1142_v57, %v2126_v30  ;;  %vm871_vm3 = vweird.f32 %v2059_v1 }
  0xce   :  { %1003 = vst.msk [vmem:[%s2258_s2 + $0xc8] sm:$0xff] %vm977_vm0, %v970_v4  ;;  %v870_v0 = vmul.f32 %v2137_v22, %v869_v63  ;;  %v908_v6 = vmul.f32 0.5, %v907_v2  ;;  %vm873_vm4 = vmor %vm871_vm3, %vm872_vm1  ;;  %1145 = vrsqrt.f32 %v2196_v61  ;;  %vm617_vm5 = vcmp.gt.f32.partialorder %v2059_v1, 0.0 }
  0xcf   :  { %v919_v5 = vsub.f32 1.5, %v918_v59  ;;  %v897_v8 = vmul.f32 %v1142_v57, %v896_v55  ;;  %vm912_vm7 = vweird.f32 %v1140_v51  ;;  %vm622_vm8 = vcmp.gt.f32.partialorder %v2097_v17, 0.0 }
  0xd0   :  { %v874_v10 = vsel %vm873_vm4, %v2137_v22, %v870_v0  ;;  %v909_v11 = vsub.f32 1.5, %v908_v6  ;;  %vm911_vm9 = vweird.f32 %v2103_v19  ;;  %vm902_vm11 = vweird.f32 %v1142_v57 }
  0xd1   :  { %v920_v48 = vmul.f32 %v2150_v28, %v919_v5  ;;  %v1144_v3 = vpop.eup %1143  ;;  %v969_v12 = vsel %vm617_vm5, %v874_v10, 0.0  ;;  %v898_v14 = vmul.f32 0.5, %v897_v8  ;;  %vm913_vm10 = vmor %vm911_vm9, %vm912_vm7  ;;  %vm621_vm12 = vcmp.gt.f32.partialorder %v2103_v19, 0.0 }
  0xd2   :  { %1002 = vst.msk [vmem:[%s2258_s2 + $0xc0] sm:$0xff] %vm977_vm0, %v969_v12  ;;  %v910_v16 = vmul.f32 %v1140_v51, %v909_v11  ;;  %v936_v18 = vmul.f32 %v1144_v3, %v2172_v50  ;;  %vm901_vm13 = vweird.f32 %v2126_v30  ;;  %vm620_vm15 = vcmp.gt.f32.partialorder %v2126_v30, 0.0 }
  0xd3   :  { %v924_v13 = vsel %vm923_vm6, %v2150_v28, %v920_v48  ;;  %v899_v17 = vsub.f32 1.5, %v898_v14  ;;  %vm903_vm14 = vmor %vm901_vm13, %vm902_vm11  ;;  %vm942_vm1 = vweird.f32 %v1144_v3  ;;  %vm941_vm2 = vweird.f32 %v2172_v50 }
  0xd4   :  { %v974_v1 = vsel %vm622_vm8, %v924_v13, 0.0  ;;  %v914_v7 = vsel %vm913_vm10, %v1140_v51, %v910_v16  ;;  %v937_v20 = vmul.f32 %v1144_v3, %v936_v18  ;;  %v1146_v21 = vpop.eup %1145  ;;  %vm943_vm3 = vmor %vm941_vm2, %vm942_vm1  ;;  %vm624_vm4 = vcmp.gt.f32.partialorder %v2172_v50, 0.0 }
  0xd5   :  { %1007 = vst.msk [vmem:[%s2258_s2 + $0xe8] sm:$0xff] %vm977_vm0, %v974_v1  ;;  %v973_v9 = vsel %vm621_vm12, %v914_v7, 0.0  ;;  %v900_v23 = vmul.f32 %v1142_v57, %v899_v17  ;;  %v926_v25 = vmul.f32 %v1146_v21, %v2196_v61  ;;  %vm932_vm5 = vweird.f32 %v1146_v21 }
  0xd6   :  { %1006 = vst.msk [vmem:[%s2258_s2 + $0xe0] sm:$0xff] %vm977_vm0, %v973_v9  ;;  %v938_v24 = vmul.f32 0.5, %v937_v20  ;;  %vm931_vm6 = vweird.f32 %v2196_v61  ;;  %vm623_vm8 = vcmp.gt.f32.partialorder %v2196_v61, 0.0 }
  0xd7   :  { %v904_v26 = vsel %vm903_vm14, %v1142_v57, %v900_v23  ;;  %v927_v29 = vmul.f32 %v1146_v21, %v926_v25  ;;  %vm933_vm7 = vmor %vm931_vm6, %vm932_vm5 }
  0xd8   :  { %v972_v19 = vsel %vm620_vm15, %v904_v26, 0.0  ;;  %v939_v15 = vsub.f32 1.5, %v938_v24 }
  0xd9   :  { %1005 = vst.msk [vmem:[%s2258_s2 + $0xd8] sm:$0xff] %vm977_vm0, %v972_v19  ;;  %v928_v33 = vmul.f32 0.5, %v927_v29 }
  0xda   :  { %v940_v27 = vmul.f32 %v1144_v3, %v939_v15 }
  0xdb   :  { %v929_v35 = vsub.f32 1.5, %v928_v33 }
  0xdc   :  { %v944_v34 = vsel %vm943_vm3, %v1144_v3, %v940_v27 }
  0xdd   :  { %v976_v30 = vsel %vm624_vm4, %v944_v34, 0.0  ;;  %v930_v36 = vmul.f32 %v1146_v21, %v929_v35 }
  0xde   :  { %1009 = vst.msk [vmem:[%s2258_s2 + $0xf8] sm:$0xff] %vm977_vm0, %v976_v30 }
  0xdf   :  { %v934_v37 = vsel %vm933_vm7, %v1146_v21, %v930_v36 }
  0xe0   :  { %v975_v22 = vsel %vm623_vm8, %v934_v37, 0.0 }
  0xe1   :  { %1008 = vst.msk [vmem:[%s2258_s2 + $0xf0] sm:$0xff] %vm977_vm0, %v975_v22 }

// kernel: _gcn_conv_impl.3
= control target key start
LH: loop header
LB: loop body
LE: loop exit
PB: predicated region body
PF: predicated region fallthrough
CT: control target
= control target key end

     0   :  { %v1239_v2 = vmov 0   ;;  %s1776_s1 = inlined_call_operand.vmem [shape: bf16[256,128], index: 1, kind: input, shape index: {}]   ;;  %s1777_s2 = inlined_call_operand.vmem [shape: f32[256,1], index: 2, kind: input, shape index: {}]   ;;  %s1778_s0 = inlined_call_operand.vmem [shape: bf16[256,256], index: 0, kind: input, shape index: {}]   ;;  %s1779_s3 = inlined_call_operand.vmem [shape: f32[1,128], index: 3, kind: input, shape index: {}]   ;;  %s1780_s4 = inlined_call_operand.vmem [shape: f32[256,128], index: 4, kind: output, shape index: {}]  }
   0x1   :  { %v1209_v0 = vld [vmem:[%s1776_s1 + $0x38] sm:$0xff]  ;;  %1236 = vset.pattern.permute.xlu1 %v1239_v2  ;;  %1235 = vset.pattern.permute.xlu0 %v1239_v2  ;;  %v1208_v3 = vld [vmem:[%s1776_s1 + $0x30] sm:$0xff]  ;;  %v650_v5 = vld [vmem:[%s1777_s2] sm:$0xff] }
   0x2   :  { %v1217_v1 = vld [vmem:[%s1776_s1 + $0x78] sm:$0xff]  ;;  %1237 = vset.pattern.permute.xlu2 %v1239_v2  ;;  %405 = vmatpush.bf16.msra.mxu0 %v1209_v0  ;;  %v652_v4 = vld [vmem:[%s1777_s2 + $0x10] sm:$0xff]  ;;  %v1207_v7 = vld [vmem:[%s1776_s1 + $0x28] sm:$0xff] }
   0x3   :  { %1218 = vmatpush.bf16.msra.mxu2 %v1209_v0  ;;  %494 = vmatpush.bf16.msra.mxu1 %v1217_v1  ;;  %v1216_v6 = vld [vmem:[%s1776_s1 + $0x70] sm:$0xff]  ;;  %v1215_v8 = vld [vmem:[%s1776_s1 + $0x68] sm:$0xff]  ;;  %v653_v9 = vld [vmem:[%s1777_s2 + $0x18] sm:$0xff] }
   0x4   :  { %1226 = vmatpush.bf16.msra.mxu3 %v1217_v1  ;;  %726 = vperm.xlu1 %1236, %v652_v4   ;;  %v651_v10 = vld [vmem:[%s1777_s2 + $0x8] sm:$0xff]  ;;  %v1206_v11 = vld [vmem:[%s1776_s1 + $0x20] sm:$0xff]  ;;  %v1205_v14 = vld [vmem:[%s1776_s1 + $0x18] sm:$0xff] }
   0x5   :  { %716 = vperm.xlu0 %1235, %v650_v5   ;;  %v654_v12 = vld [vmem:[%s1777_s2 + $0x20] sm:$0xff]  ;;  %v1213_v15 = vld [vmem:[%s1776_s1 + $0x58] sm:$0xff]  ;;  %v656_v17 = vld [vmem:[%s1777_s2 + $0x30] sm:$0xff] }
   0x6   :  { %406 = vmatpush.bf16.msra.mxu0 %v1208_v3  ;;  %v1214_v13 = vld [vmem:[%s1776_s1 + $0x60] sm:$0xff]  ;;  %736 = vperm.xlu2 %1237, %v654_v12   ;;  %v657_v16 = vld [vmem:[%s1777_s2 + $0x38] sm:$0xff]  ;;  %v1204_v18 = vld [vmem:[%s1776_s1 + $0x10] sm:$0xff] }
   0x7   :  { %1219 = vmatpush.bf16.msra.mxu2 %v1208_v3  ;;  %495 = vmatpush.bf16.msra.mxu1 %v1216_v6  ;;  %v655_v19 = vld [vmem:[%s1777_s2 + $0x28] sm:$0xff]  ;;  %v1212_v20 = vld [vmem:[%s1776_s1 + $0x50] sm:$0xff]  ;;  %v1202_v23 = vld [vmem:[%s1776_s1] sm:$0xff] }
   0x8   :  { %1227 = vmatpush.bf16.msra.mxu3 %v1216_v6  ;;  %v1203_v21 = vld [vmem:[%s1776_s1 + $0x8] sm:$0xff]  ;;  %v980_v24 = vld [vmem:[%s1778_s0] sm:$0xf]  ;;  %v660_v28 = vld [vmem:[%s1777_s2 + $0x50] sm:$0xff] }
   0x9   :  { %v1211_v22 = vld [vmem:[%s1776_s1 + $0x48] sm:$0xff]  ;;  %v1210_v26 = vld [vmem:[%s1776_s1 + $0x40] sm:$0xff]  ;;  %v661_v42 = vld [vmem:[%s1777_s2 + $0x58] sm:$0xff] }
   0xa   :  { %407 = vmatpush.bf16.msra.mxu0 %v1207_v7  ;;  %v1171_v25 = vld [vmem:[%s1778_s0 + $0x4] sm:$0xf0]  ;;  %v1044_v27 = vld [vmem:[%s1778_s0 + $0x80] sm:$0xf]  ;;  %v1170_v31 = vld [vmem:[%s1778_s0 + $0x4] sm:$0xf] }
   0xb   :  { %1220 = vmatpush.bf16.msra.mxu2 %v1207_v7  ;;  %496 = vmatpush.bf16.msra.mxu1 %v1215_v8  ;;  %v659_v29 = vld [vmem:[%s1777_s2 + $0x48] sm:$0xff]  ;;  %v658_v32 = vld [vmem:[%s1777_s2 + $0x40] sm:$0xff]  ;;  %v981_v36 = vor.u32 %v1171_v25, %v980_v24  ;;  %v988_v43 = vld [vmem:[%s1778_s0 + $0x10] sm:$0xf] }
   0xc   :  { %1228 = vmatpush.bf16.msra.mxu3 %v1215_v8  ;;  %731 = vperm.xlu1 %1236, %v653_v9   ;;  %v1187_v30 = vld [vmem:[%s1778_s0 + $0x84] sm:$0xf0]  ;;  %v982_v33 = vld [vmem:[%s1778_s0 + $0x8] sm:$0xf0]  ;;  %v1186_v34 = vld [vmem:[%s1778_s0 + $0x84] sm:$0xf] }
   0xd   :  { %721 = vperm.xlu0 %1235, %v651_v10   ;;  %v1046_v35 = vld [vmem:[%s1778_s0 + $0x88] sm:$0xf0]  ;;  %v1045_v37 = vor.u32 %v1187_v30, %v1044_v27  ;;  %v985_v38 = vor.u32 %v1170_v31, %v982_v33  ;;  %v662_v41 = vld [vmem:[%s1777_s2 + $0x60] sm:$0xff]  ;;  %v1173_v44 = vld [vmem:[%s1778_s0 + $0x14] sm:$0xf0] }
   0xe   :  { %408 = vmatpush.bf16.msra.mxu0 %v1206_v11  ;;  %741 = vperm.xlu2 %1237, %v655_v19   ;;  %v1049_v39 = vor.u32 %v1186_v34, %v1046_v35  ;;  %v663_v40 = vld [vmem:[%s1777_s2 + $0x68] sm:$0xff]  ;;  %v1052_v45 = vld [vmem:[%s1778_s0 + $0x90] sm:$0xf]  ;;  %v666_v46 = vld [vmem:[%s1777_s2 + $0x80] sm:$0xff]  ;;  %v989_v54 = vor.u32 %v1173_v44, %v988_v43 }
   0xf   :  { %1221 = vmatpush.bf16.msra.mxu2 %v1206_v11  ;;  %497 = vmatpush.bf16.msra.mxu1 %v1214_v13  ;;  %v665_v47 = vld [vmem:[%s1777_s2 + $0x78] sm:$0xff]  ;;  %v1172_v49 = vld [vmem:[%s1778_s0 + $0x14] sm:$0xf]  ;;  %v667_v60 = vld [vmem:[%s1777_s2 + $0x88] sm:$0xff] }
  0x10   :  { %1229 = vmatpush.bf16.msra.mxu3 %v1214_v13  ;;  %v1189_v48 = vld [vmem:[%s1778_s0 + $0x94] sm:$0xf0]  ;;  %v664_v50 = vld [vmem:[%s1777_s2 + $0x70] sm:$0xff]  ;;  %v990_v51 = vld [vmem:[%s1778_s0 + $0x18] sm:$0xf0] }
  0x11   :  { %v1188_v52 = vld [vmem:[%s1778_s0 + $0x94] sm:$0xf]  ;;  %v1054_v53 = vld [vmem:[%s1778_s0 + $0x98] sm:$0xf0]  ;;  %v1053_v55 = vor.u32 %v1189_v48, %v1052_v45  ;;  %v993_v56 = vor.u32 %v1172_v49, %v990_v51  ;;  %v996_v61 = vld [vmem:[%s1778_s0 + $0x20] sm:$0xf] }
  0x12   :  { %409 = vmatpush.bf16.msra.mxu0 %v1205_v14  ;;  %v1057_v57 = vor.u32 %v1188_v52, %v1054_v53  ;;  %v669_v58 = vld [vmem:[%s1777_s2 + $0x98] sm:$0xff]  ;;  %v668_v59 = vld [vmem:[%s1777_s2 + $0x90] sm:$0xff]  ;;  %v1175_v62 = vld [vmem:[%s1778_s0 + $0x24] sm:$0xf0] }
  0x13   :  { %1222 = vmatpush.bf16.msra.mxu2 %v1205_v14  ;;  %498 = vmatpush.bf16.msra.mxu1 %v1213_v15  ;;  %v672_v63 = vld [vmem:[%s1777_s2 + $0xb0] sm:$0xff]  ;;  %v671_v0 = vld [vmem:[%s1777_s2 + $0xa8] sm:$0xff]  ;;  %v1060_v1 = vld [vmem:[%s1778_s0 + $0xa0] sm:$0xf]  ;;  %v997_v7 = vor.u32 %v1175_v62, %v996_v61 }
  0x14   :  { %1230 = vmatpush.bf16.msra.mxu3 %v1213_v15  ;;  %751 = vperm.xlu1 %1236, %v657_v16   ;;  %v1191_v2 = vld [vmem:[%s1778_s0 + $0xa4] sm:$0xf0]  ;;  %v1174_v3 = vld [vmem:[%s1778_s0 + $0x24] sm:$0xf]  ;;  %v998_v4 = vld [vmem:[%s1778_s0 + $0x28] sm:$0xf0] }
  0x15   :  { %746 = vperm.xlu0 %1235, %v656_v17   ;;  %v1190_v5 = vld [vmem:[%s1778_s0 + $0xa4] sm:$0xf]  ;;  %v1062_v6 = vld [vmem:[%s1778_s0 + $0xa8] sm:$0xf0]  ;;  %v1061_v8 = vor.u32 %v1191_v2, %v1060_v1  ;;  %v1001_v9 = vor.u32 %v1174_v3, %v998_v4  ;;  %v1004_v14 = vld [vmem:[%s1778_s0 + $0x30] sm:$0xf] }
  0x16   :  { %410 = vmatpush.bf16.msra.mxu0 %v1204_v18  ;;  %756 = vperm.xlu2 %1237, %v658_v32   ;;  %v1065_v10 = vor.u32 %v1190_v5, %v1062_v6  ;;  %v675_v11 = vld [vmem:[%s1777_s2 + $0xc8] sm:$0xff]  ;;  %v674_v12 = vld [vmem:[%s1777_s2 + $0xc0] sm:$0xff]  ;;  %v673_v15 = vld [vmem:[%s1777_s2 + $0xb8] sm:$0xff] }
  0x17   :  { %1223 = vmatpush.bf16.msra.mxu2 %v1204_v18  ;;  %499 = vmatpush.bf16.msra.mxu1 %v1212_v20  ;;  %v670_v13 = vld [vmem:[%s1777_s2 + $0xa0] sm:$0xff]  ;;  %v1177_v16 = vld [vmem:[%s1778_s0 + $0x34] sm:$0xf0]  ;;  %v1068_v19 = vld [vmem:[%s1778_s0 + $0xb0] sm:$0xf] }
  0x18   :  { %1231 = vmatpush.bf16.msra.mxu3 %v1212_v20  ;;  %v678_v17 = vld [vmem:[%s1777_s2 + $0xe0] sm:$0xff]  ;;  %v677_v18 = vld [vmem:[%s1777_s2 + $0xd8] sm:$0xff]  ;;  %v1005_v25 = vor.u32 %v1177_v16, %v1004_v14  ;;  %v680_v30 = vld [vmem:[%s1777_s2 + $0xf0] sm:$0xff] }
  0x19   :  { %v1193_v20 = vld [vmem:[%s1778_s0 + $0xb4] sm:$0xf0]  ;;  %v1070_v24 = vld [vmem:[%s1778_s0 + $0xb8] sm:$0xf0]  ;;  %v676_v31 = vld [vmem:[%s1777_s2 + $0xd0] sm:$0xff] }
  0x1a   :  { %411 = vmatpush.bf16.msra.mxu0 %v1203_v21  ;;  %v679_v32 = vld [vmem:[%s1777_s2 + $0xe8] sm:$0xff]  ;;  %v1012_v33 = vld [vmem:[%s1778_s0 + $0x40] sm:$0xf]  ;;  %v1020_v45 = vld [vmem:[%s1778_s0 + $0x50] sm:$0xf] }
  0x1b   :  { %1224 = vmatpush.bf16.msra.mxu2 %v1203_v21  ;;  %500 = vmatpush.bf16.msra.mxu1 %v1211_v22  ;;  %v1176_v21 = vld [vmem:[%s1778_s0 + $0x34] sm:$0xf]  ;;  %v1179_v34 = vld [vmem:[%s1778_s0 + $0x44] sm:$0xf0]  ;;  %v1076_v35 = vld [vmem:[%s1778_s0 + $0xc0] sm:$0xf] }
  0x1c   :  { %1232 = vmatpush.bf16.msra.mxu3 %v1211_v22  ;;  %766 = vperm.xlu1 %1236, %v660_v28   ;;  %v1006_v22 = vld [vmem:[%s1778_s0 + $0x38] sm:$0xf0]  ;;  %v1197_v48 = vld [vmem:[%s1778_s0 + $0xd4] sm:$0xf0]  ;;  %v1180_v49 = vld [vmem:[%s1778_s0 + $0x54] sm:$0xf] }
  0x1d   :  { %761 = vperm.xlu0 %1235, %v659_v29   ;;  %v1009_v27 = vor.u32 %v1176_v21, %v1006_v22  ;;  %v681_v29 = vld [vmem:[%s1777_s2 + $0xf8] sm:$0xff]  ;;  %v1196_v51 = vld [vmem:[%s1778_s0 + $0xd4] sm:$0xf]  ;;  %v1199_v61 = vld [vmem:[%s1778_s0 + $0xe4] sm:$0xf0] }
  0x1e   :  { %412 = vmatpush.bf16.msra.mxu0 %v1202_v23  ;;  %771 = vperm.xlu2 %1237, %v661_v42   ;;  %v1086_v52 = vld [vmem:[%s1778_s0 + $0xd8] sm:$0xf0]  ;;  %v1182_v62 = vld [vmem:[%s1778_s0 + $0x64] sm:$0xf]  ;;  %v1030_v1 = vld [vmem:[%s1778_s0 + $0x68] sm:$0xf0] }
  0x1f   :  { %1225 = vmatpush.bf16.msra.mxu2 %v1202_v23  ;;  %501 = vmatpush.bf16.msra.mxu1 %v1210_v26  ;;  %v1192_v23 = vld [vmem:[%s1778_s0 + $0xb4] sm:$0xf]  ;;  %v1198_v2 = vld [vmem:[%s1778_s0 + $0xe4] sm:$0xf]  ;;  %v1094_v3 = vld [vmem:[%s1778_s0 + $0xe8] sm:$0xf0]  ;;  %v1033_v6 = vor.u32 %v1182_v62, %v1030_v1 }
  0x20   :  { %1233 = vmatpush.bf16.msra.mxu3 %v1210_v26  ;;  %v1069_v26 = vor.u32 %v1193_v20, %v1068_v19  ;;  %v1073_v28 = vor.u32 %v1192_v23, %v1070_v24  ;;  %v1100_v14 = vld [vmem:[%s1778_s0 + $0xf0] sm:$0xf]  ;;  %v1184_v16 = vld [vmem:[%s1778_s0 + $0x74] sm:$0xf]  ;;  %v1102_v19 = vld [vmem:[%s1778_s0 + $0xf8] sm:$0xf0] }
  0x21   :  { %413 = vmatmul.bf16.vlgmr.msra.gmra.mxu0 %v981_v36  ;;  %v1195_v36 = vld [vmem:[%s1778_s0 + $0xc4] sm:$0xf0] }
  0x22   :  { %453 = vmatmul.bf16.vlgmr.msra.gmra.mxu2 %v1045_v37  ;;  %502 = vmatmul.bf16.vlgmr.msra.gmra.mxu1 %v985_v38  ;;  %v1178_v37 = vld [vmem:[%s1778_s0 + $0x44] sm:$0xf]  ;;  %v1014_v38 = vld [vmem:[%s1778_s0 + $0x48] sm:$0xf0]  ;;  %v1077_v42 = vor.u32 %v1195_v36, %v1076_v35 }
  0x23   :  { %542 = vmatmul.bf16.vlgmr.msra.gmra.mxu3 %v1049_v39  ;;  %v1194_v39 = vld [vmem:[%s1778_s0 + $0xc4] sm:$0xf]  ;;  %v1017_v43 = vor.u32 %v1178_v37, %v1014_v38 }
  0x24   :  { %781 = vperm.xlu1 %1236, %v663_v40   ;;  %v1078_v40 = vld [vmem:[%s1778_s0 + $0xc8] sm:$0xf0] }
  0x25   :  { %776 = vperm.xlu0 %1235, %v662_v41   ;;  %v1013_v41 = vor.u32 %v1179_v34, %v1012_v33  ;;  %v1081_v44 = vor.u32 %v1194_v39, %v1078_v40  ;;  %v1626_v33 = vld [vmem:[%s1779_s3] ss:$0 sm:$0xff] }
  0x26   :  { %786 = vperm.xlu2 %1237, %v664_v50   ;;  %v1022_v50 = vld [vmem:[%s1778_s0 + $0x58] sm:$0xf0] }
  0x2c   :  { %796 = vperm.xlu1 %1236, %v666_v46   ;;  %v1181_v46 = vld [vmem:[%s1778_s0 + $0x54] sm:$0xf0] }
  0x2d   :  { %791 = vperm.xlu0 %1235, %v665_v47   ;;  %v1084_v47 = vld [vmem:[%s1778_s0 + $0xd0] sm:$0xf]  ;;  %v1021_v53 = vor.u32 %v1181_v46, %v1020_v45 }
  0x2e   :  { %801 = vperm.xlu2 %1237, %v667_v60   ;;  %v1092_v60 = vld [vmem:[%s1778_s0 + $0xe0] sm:$0xf] }
  0x2f   :  { %v1093_v5 = vor.u32 %v1199_v61, %v1092_v60 }
  0x31   :  { %418 = vmatmul.bf16.gmra.mxu0 %v989_v54  ;;  %v1085_v54 = vor.u32 %v1197_v48, %v1084_v47 }
  0x32   :  { %458 = vmatmul.bf16.gmra.mxu2 %v1053_v55  ;;  %507 = vmatmul.bf16.gmra.mxu1 %v993_v56  ;;  %v1025_v55 = vor.u32 %v1180_v49, %v1022_v50  ;;  %v1089_v56 = vor.u32 %v1196_v51, %v1086_v52 }
  0x33   :  { %547 = vmatmul.bf16.gmra.mxu3 %v1057_v57 }
  0x34   :  { %811 = vperm.xlu1 %1236, %v669_v58   ;;  %v1028_v58 = vld [vmem:[%s1778_s0 + $0x60] sm:$0xf] }
  0x35   :  { %806 = vperm.xlu0 %1235, %v668_v59   ;;  %v1183_v59 = vld [vmem:[%s1778_s0 + $0x64] sm:$0xf0] }
  0x36   :  { %816 = vperm.xlu2 %1237, %v670_v13   ;;  %v1029_v4 = vor.u32 %v1183_v59, %v1028_v58  ;;  %v1185_v13 = vld [vmem:[%s1778_s0 + $0x74] sm:$0xf0] }
  0x3c   :  { %826 = vperm.xlu1 %1236, %v672_v63  }
  0x3d   :  { %821 = vperm.xlu0 %1235, %v671_v0  }
  0x3e   :  { %831 = vperm.xlu2 %1237, %v673_v15   ;;  %v1201_v15 = vld [vmem:[%s1778_s0 + $0xf4] sm:$0xf0] }
  0x3f   :  { %v1101_v21 = vor.u32 %v1201_v15, %v1100_v14 }
  0x41   :  { %423 = vmatmul.bf16.gmra.mxu0 %v997_v7  ;;  %v1097_v7 = vor.u32 %v1198_v2, %v1094_v3 }
  0x42   :  { %463 = vmatmul.bf16.gmra.mxu2 %v1061_v8  ;;  %512 = vmatmul.bf16.gmra.mxu1 %v1001_v9 }
  0x43   :  { %552 = vmatmul.bf16.gmra.mxu3 %v1065_v10 }
  0x44   :  { %841 = vperm.xlu1 %1236, %v675_v11  }
  0x45   :  { %836 = vperm.xlu0 %1235, %v674_v12   ;;  %v1036_v12 = vld [vmem:[%s1778_s0 + $0x70] sm:$0xf] }
  0x46   :  { %846 = vperm.xlu2 %1237, %v676_v31   ;;  %v1037_v20 = vor.u32 %v1185_v13, %v1036_v12 }
  0x4c   :  { %856 = vperm.xlu1 %1236, %v678_v17   ;;  %v1038_v17 = vld [vmem:[%s1778_s0 + $0x78] sm:$0xf0] }
  0x4d   :  { %851 = vperm.xlu0 %1235, %v677_v18   ;;  %v1200_v18 = vld [vmem:[%s1778_s0 + $0xf4] sm:$0xf]  ;;  %v1041_v22 = vor.u32 %v1184_v16, %v1038_v17 }
  0x4e   :  { %861 = vperm.xlu2 %1237, %v679_v32   ;;  %v1105_v23 = vor.u32 %v1200_v18, %v1102_v19 }
  0x51   :  { %428 = vmatmul.bf16.gmra.mxu0 %v1005_v25 }
  0x52   :  { %468 = vmatmul.bf16.gmra.mxu2 %v1069_v26  ;;  %517 = vmatmul.bf16.gmra.mxu1 %v1009_v27 }
  0x53   :  { %557 = vmatmul.bf16.gmra.mxu3 %v1073_v28 }
  0x54   :  { %871 = vperm.xlu1 %1236, %v681_v29  }
  0x55   :  { %866 = vperm.xlu0 %1235, %v680_v30  }
  0x60   :  { %v1570_v63 = vpop.permute.xlu2 %736 }
  0x61   :  { %433 = vmatmul.bf16.gmra.mxu0 %v1013_v41 }
  0x62   :  { %473 = vmatmul.bf16.gmra.mxu2 %v1077_v42  ;;  %522 = vmatmul.bf16.gmra.mxu1 %v1017_v43 }
  0x63   :  { %562 = vmatmul.bf16.gmra.mxu3 %v1081_v44 }
  0x68   :  { %v1583_v9 = vpop.permute.xlu2 %741 }
  0x70   :  { %v1611_v24 = vpop.permute.xlu2 %756 }
  0x71   :  { %438 = vmatmul.bf16.gmra.mxu0 %v1021_v53 }
  0x72   :  { %478 = vmatmul.bf16.gmra.mxu2 %v1085_v54  ;;  %527 = vmatmul.bf16.gmra.mxu1 %v1025_v55 }
  0x73   :  { %567 = vmatmul.bf16.gmra.mxu3 %v1089_v56 }
  0x76   :  { %v1553_v57 = vpop.permute.xlu1 %726 }
  0x77   :  { %v717_v0 = vpop.permute.xlu0 %716 }
  0x78   :  { %v1617_v27 = vpop.permute.xlu2 %771 }
  0x7e   :  { %v1581_v8 = vpop.permute.xlu1 %731 }
  0x7f   :  { %v722_v10 = vpop.permute.xlu0 %721 }
  0x80   :  { %v1628_v35 = vpop.permute.xlu2 %786 }
  0x81   :  { %443 = vmatmul.bf16.gmra.mxu0 %v1029_v4 }
  0x82   :  { %483 = vmatmul.bf16.gmra.mxu2 %v1093_v5  ;;  %532 = vmatmul.bf16.gmra.mxu1 %v1033_v6 }
  0x83   :  { %572 = vmatmul.bf16.gmra.mxu3 %v1097_v7 }
  0x86   :  { %v1585_v11 = vpop.permute.xlu1 %751 }
  0x87   :  { %v1613_v25 = vpop.permute.xlu0 %746 }
  0x88   :  { %v802_v50 = vpop.permute.xlu2 %801 }
  0x8e   :  { %v1615_v26 = vpop.permute.xlu1 %766 }
  0x8f   :  { %v1619_v28 = vpop.permute.xlu0 %761 }
  0x91   :  { %448 = vmatmul.bf16.gmra.mxu0 %v1037_v20 }
  0x92   :  { %488 = vmatmul.bf16.gmra.mxu2 %v1101_v21  ;;  %537 = vmatmul.bf16.gmra.mxu1 %v1041_v22 }
  0x93   :  { %577 = vmatmul.bf16.gmra.mxu3 %v1105_v23 }
  0x96   :  { %v1621_v29 = vpop.permute.xlu1 %781 }
  0x97   :  { %v1630_v36 = vpop.permute.xlu0 %776 }
  0x9e   :  { %v414_v30 = vpop.f32.mrf.mxu0  ;;  %v797_v40 = vpop.permute.xlu1 %796 }
  0x9f   :  { %v503_v31 = vpop.f32.mrf.mxu1  ;;  %v1641_v51 = vpop.permute.xlu0 %791 }
  0xa0   :  { %v504_v32 = vadd.f32 %v503_v31, %v414_v30 }
  0xa2   :  { %v874_v34 = vmul.f32 %v717_v0, %v504_v32  ;;  %v817_v32 = vpop.permute.xlu2 %816 }
  0xa4   :  { %v910_v37 = vadd.f32 %v1626_v33, %v874_v34 }
  0xa5   :  { %v454_v38 = vpop.f32.mrf.mxu2 }
  0xa6   :  { %v543_v39 = vpop.f32.mrf.mxu3  ;;  %942 = vst [vmem:[%s1780_s4] sm:$0xff] %v910_v37  ;;  %v416_v42 = vpop.f32.mrf.mxu0 }
  0xa7   :  { %v544_v41 = vadd.f32 %v543_v39, %v454_v38  ;;  %v505_v43 = vpop.f32.mrf.mxu1  ;;  %v807_v3 = vpop.permute.xlu0 %806 }
  0xa8   :  { %v506_v45 = vadd.f32 %v505_v43, %v416_v42  ;;  %v812_v16 = vpop.permute.xlu1 %811 }
  0xa9   :  { %v890_v44 = vmul.f32 %v797_v40, %v544_v41 }
  0xaa   :  { %v875_v47 = vmul.f32 %v722_v10, %v506_v45 }
  0xab   :  { %v926_v46 = vadd.f32 %v1626_v33, %v890_v44 }
  0xac   :  { %v911_v48 = vadd.f32 %v1626_v33, %v875_v47 }
  0xad   :  { %958 = vst [vmem:[%s1780_s4 + $0x80] sm:$0xff] %v926_v46  ;;  %v456_v49 = vpop.f32.mrf.mxu2 }
  0xae   :  { %v545_v52 = vpop.f32.mrf.mxu3  ;;  %943 = vst [vmem:[%s1780_s4 + $0x8] sm:$0xff] %v911_v48  ;;  %v419_v54 = vpop.f32.mrf.mxu0 }
  0xaf   :  { %v546_v53 = vadd.f32 %v545_v52, %v456_v49  ;;  %v508_v55 = vpop.f32.mrf.mxu1  ;;  %v822_v45 = vpop.permute.xlu0 %821 }
  0xb0   :  { %v509_v58 = vadd.f32 %v508_v55, %v419_v54 }
  0xb1   :  { %v891_v56 = vmul.f32 %v802_v50, %v546_v53 }
  0xb2   :  { %v876_v60 = vmul.f32 %v1553_v57, %v509_v58 }
  0xb3   :  { %v927_v59 = vadd.f32 %v1626_v33, %v891_v56  ;;  %v827_v56 = vpop.permute.xlu1 %826 }
  0xb4   :  { %v912_v61 = vadd.f32 %v1626_v33, %v876_v60 }
  0xb5   :  { %959 = vst [vmem:[%s1780_s4 + $0x88] sm:$0xff] %v927_v59  ;;  %v459_v62 = vpop.f32.mrf.mxu2 }
  0xb6   :  { %v548_v0 = vpop.f32.mrf.mxu3  ;;  %944 = vst [vmem:[%s1780_s4 + $0x10] sm:$0xff] %v912_v61  ;;  %v421_v2 = vpop.f32.mrf.mxu0 }
  0xb7   :  { %v549_v1 = vadd.f32 %v548_v0, %v459_v62  ;;  %v510_v4 = vpop.f32.mrf.mxu1 }
  0xb8   :  { %v511_v6 = vadd.f32 %v510_v4, %v421_v2  ;;  %v832_v4 = vpop.permute.xlu2 %831 }
  0xb9   :  { %v892_v5 = vmul.f32 %v807_v3, %v549_v1 }
  0xba   :  { %v877_v7 = vmul.f32 %v1581_v8, %v511_v6 }
  0xbb   :  { %v928_v57 = vadd.f32 %v1626_v33, %v892_v5 }
  0xbc   :  { %v913_v10 = vadd.f32 %v1626_v33, %v877_v7 }
  0xbd   :  { %960 = vst [vmem:[%s1780_s4 + $0x90] sm:$0xff] %v928_v57  ;;  %v461_v12 = vpop.f32.mrf.mxu2 }
  0xbe   :  { %v550_v13 = vpop.f32.mrf.mxu3  ;;  %945 = vst [vmem:[%s1780_s4 + $0x18] sm:$0xff] %v913_v10  ;;  %v424_v15 = vpop.f32.mrf.mxu0 }
  0xbf   :  { %v551_v14 = vadd.f32 %v550_v13, %v461_v12  ;;  %v513_v17 = vpop.f32.mrf.mxu1 }
  0xc0   :  { %v514_v19 = vadd.f32 %v513_v17, %v424_v15 }
  0xc1   :  { %v893_v18 = vmul.f32 %v812_v16, %v551_v14  ;;  %v837_v16 = vpop.permute.xlu0 %836 }
  0xc2   :  { %v878_v20 = vmul.f32 %v1570_v63, %v514_v19 }
  0xc3   :  { %v929_v8 = vadd.f32 %v1626_v33, %v893_v18 }
  0xc4   :  { %v914_v21 = vadd.f32 %v1626_v33, %v878_v20 }
  0xc5   :  { %961 = vst [vmem:[%s1780_s4 + $0x98] sm:$0xff] %v929_v8  ;;  %v464_v22 = vpop.f32.mrf.mxu2 }
  0xc6   :  { %v553_v23 = vpop.f32.mrf.mxu3  ;;  %946 = vst [vmem:[%s1780_s4 + $0x20] sm:$0xff] %v914_v21  ;;  %v426_v31 = vpop.f32.mrf.mxu0 }
  0xc7   :  { %v554_v30 = vadd.f32 %v553_v23, %v464_v22  ;;  %v515_v34 = vpop.f32.mrf.mxu1 }
  0xc8   :  { %v516_v38 = vadd.f32 %v515_v34, %v426_v31  ;;  %v842_v31 = vpop.permute.xlu1 %841 }
  0xc9   :  { %v894_v37 = vmul.f32 %v817_v32, %v554_v30 }
  0xca   :  { %v879_v39 = vmul.f32 %v1583_v9, %v516_v38 }
  0xcb   :  { %v930_v63 = vadd.f32 %v1626_v33, %v894_v37 }
  0xcc   :  { %v915_v40 = vadd.f32 %v1626_v33, %v879_v39 }
  0xcd   :  { %962 = vst [vmem:[%s1780_s4 + $0xa0] sm:$0xff] %v930_v63  ;;  %v466_v41 = vpop.f32.mrf.mxu2 }
  0xce   :  { %v555_v42 = vpop.f32.mrf.mxu3  ;;  %947 = vst [vmem:[%s1780_s4 + $0x28] sm:$0xff] %v915_v40  ;;  %v429_v44 = vpop.f32.mrf.mxu0 }
  0xcf   :  { %v556_v43 = vadd.f32 %v555_v42, %v466_v41  ;;  %v518_v46 = vpop.f32.mrf.mxu1 }
  0xd0   :  { %v519_v48 = vadd.f32 %v518_v46, %v429_v44 }
  0xd1   :  { %v895_v47 = vmul.f32 %v822_v45, %v556_v43  ;;  %v847_v43 = vpop.permute.xlu2 %846 }
  0xd2   :  { %v880_v49 = vmul.f32 %v1613_v25, %v519_v48 }
  0xd3   :  { %v931_v9 = vadd.f32 %v1626_v33, %v895_v47 }
  0xd4   :  { %v916_v50 = vadd.f32 %v1626_v33, %v880_v49 }
  0xd5   :  { %963 = vst [vmem:[%s1780_s4 + $0xa8] sm:$0xff] %v931_v9  ;;  %v469_v52 = vpop.f32.mrf.mxu2 }
  0xd6   :  { %v558_v53 = vpop.f32.mrf.mxu3  ;;  %948 = vst [vmem:[%s1780_s4 + $0x30] sm:$0xff] %v916_v50  ;;  %v431_v55 = vpop.f32.mrf.mxu0 }
  0xd7   :  { %v559_v54 = vadd.f32 %v558_v53, %v469_v52  ;;  %v520_v58 = vpop.f32.mrf.mxu1  ;;  %v852_v53 = vpop.permute.xlu0 %851 }
  0xd8   :  { %v521_v60 = vadd.f32 %v520_v58, %v431_v55 }
  0xd9   :  { %v896_v59 = vmul.f32 %v827_v56, %v559_v54 }
  0xda   :  { %v881_v61 = vmul.f32 %v1585_v11, %v521_v60 }
  0xdb   :  { %v932_v25 = vadd.f32 %v1626_v33, %v896_v59 }
  0xdc   :  { %v917_v62 = vadd.f32 %v1626_v33, %v881_v61 }
  0xdd   :  { %964 = vst [vmem:[%s1780_s4 + $0xb0] sm:$0xff] %v932_v25  ;;  %v471_v0 = vpop.f32.mrf.mxu2 }
  0xde   :  { %v560_v1 = vpop.f32.mrf.mxu3  ;;  %949 = vst [vmem:[%s1780_s4 + $0x38] sm:$0xff] %v917_v62  ;;  %v434_v3 = vpop.f32.mrf.mxu0 }
  0xdf   :  { %v561_v2 = vadd.f32 %v560_v1, %v471_v0  ;;  %v523_v5 = vpop.f32.mrf.mxu1  ;;  %v857_v0 = vpop.permute.xlu1 %856 }
  0xe0   :  { %v524_v57 = vadd.f32 %v523_v5, %v434_v3 }
  0xe1   :  { %v897_v6 = vmul.f32 %v832_v4, %v561_v2 }
  0xe2   :  { %v882_v7 = vmul.f32 %v1611_v24, %v524_v57 }
  0xe3   :  { %v933_v11 = vadd.f32 %v1626_v33, %v897_v6 }
  0xe4   :  { %v918_v10 = vadd.f32 %v1626_v33, %v882_v7 }
  0xe5   :  { %965 = vst [vmem:[%s1780_s4 + $0xb8] sm:$0xff] %v933_v11  ;;  %v474_v12 = vpop.f32.mrf.mxu2 }
  0xe6   :  { %v563_v13 = vpop.f32.mrf.mxu3  ;;  %950 = vst [vmem:[%s1780_s4 + $0x40] sm:$0xff] %v918_v10  ;;  %v436_v15 = vpop.f32.mrf.mxu0 }
  0xe7   :  { %v564_v14 = vadd.f32 %v563_v13, %v474_v12  ;;  %v525_v17 = vpop.f32.mrf.mxu1  ;;  %v862_v10 = vpop.permute.xlu2 %861 }
  0xe8   :  { %v526_v19 = vadd.f32 %v525_v17, %v436_v15 }
  0xe9   :  { %v898_v18 = vmul.f32 %v837_v16, %v564_v14 }
  0xea   :  { %v883_v8 = vmul.f32 %v1619_v28, %v526_v19 }
  0xeb   :  { %v934_v24 = vadd.f32 %v1626_v33, %v898_v18 }
  0xec   :  { %v919_v20 = vadd.f32 %v1626_v33, %v883_v8  ;;  %v867_v8 = vpop.permute.xlu0 %866 }
  0xed   :  { %966 = vst [vmem:[%s1780_s4 + $0xc0] sm:$0xff] %v934_v24  ;;  %v476_v21 = vpop.f32.mrf.mxu2 }
  0xee   :  { %v565_v22 = vpop.f32.mrf.mxu3  ;;  %951 = vst [vmem:[%s1780_s4 + $0x48] sm:$0xff] %v919_v20  ;;  %v439_v30 = vpop.f32.mrf.mxu0 }
  0xef   :  { %v566_v23 = vadd.f32 %v565_v22, %v476_v21  ;;  %v528_v32 = vpop.f32.mrf.mxu1 }
  0xf0   :  { %v529_v37 = vadd.f32 %v528_v32, %v439_v30 }
  0xf1   :  { %v899_v34 = vmul.f32 %v842_v31, %v566_v23 }
  0xf2   :  { %v884_v38 = vmul.f32 %v1615_v26, %v529_v37  ;;  %v872_v37 = vpop.permute.xlu1 %871 }
  0xf3   :  { %v935_v28 = vadd.f32 %v1626_v33, %v899_v34 }
  0xf4   :  { %v920_v63 = vadd.f32 %v1626_v33, %v884_v38 }
  0xf5   :  { %967 = vst [vmem:[%s1780_s4 + $0xc8] sm:$0xff] %v935_v28  ;;  %v479_v39 = vpop.f32.mrf.mxu2 }
  0xf6   :  { %v568_v40 = vpop.f32.mrf.mxu3  ;;  %952 = vst [vmem:[%s1780_s4 + $0x50] sm:$0xff] %v920_v63  ;;  %v441_v42 = vpop.f32.mrf.mxu0 }
  0xf7   :  { %v569_v41 = vadd.f32 %v568_v40, %v479_v39  ;;  %v530_v44 = vpop.f32.mrf.mxu1 }
  0xf8   :  { %v531_v46 = vadd.f32 %v530_v44, %v441_v42 }
  0xf9   :  { %v900_v45 = vmul.f32 %v847_v43, %v569_v41 }
  0xfa   :  { %v885_v47 = vmul.f32 %v1617_v27, %v531_v46 }
  0xfb   :  { %v936_v26 = vadd.f32 %v1626_v33, %v900_v45 }
  0xfc   :  { %v921_v48 = vadd.f32 %v1626_v33, %v885_v47 }
  0xfd   :  { %968 = vst [vmem:[%s1780_s4 + $0xd0] sm:$0xff] %v936_v26  ;;  %v481_v9 = vpop.f32.mrf.mxu2 }
  0xfe   :  { %v570_v49 = vpop.f32.mrf.mxu3  ;;  %953 = vst [vmem:[%s1780_s4 + $0x58] sm:$0xff] %v921_v48  ;;  %v444_v52 = vpop.f32.mrf.mxu0 }
  0xff   :  { %v571_v50 = vadd.f32 %v570_v49, %v481_v9  ;;  %v533_v54 = vpop.f32.mrf.mxu1 }
 0x100   :  { %v534_v56 = vadd.f32 %v533_v54, %v444_v52 }
 0x101   :  { %v901_v55 = vmul.f32 %v852_v53, %v571_v50 }
 0x102   :  { %v886_v58 = vmul.f32 %v1630_v36, %v534_v56 }
 0x103   :  { %v937_v27 = vadd.f32 %v1626_v33, %v901_v55 }
 0x104   :  { %v922_v59 = vadd.f32 %v1626_v33, %v886_v58 }
 0x105   :  { %969 = vst [vmem:[%s1780_s4 + $0xd8] sm:$0xff] %v937_v27  ;;  %v484_v60 = vpop.f32.mrf.mxu2 }
 0x106   :  { %v573_v25 = vpop.f32.mrf.mxu3  ;;  %954 = vst [vmem:[%s1780_s4 + $0x60] sm:$0xff] %v922_v59  ;;  %v446_v62 = vpop.f32.mrf.mxu0 }
 0x107   :  { %v574_v61 = vadd.f32 %v573_v25, %v484_v60  ;;  %v535_v1 = vpop.f32.mrf.mxu1 }
 0x108   :  { %v536_v3 = vadd.f32 %v535_v1, %v446_v62 }
 0x109   :  { %v902_v2 = vmul.f32 %v857_v0, %v574_v61 }
 0x10a   :  { %v887_v4 = vmul.f32 %v1621_v29, %v536_v3 }
 0x10b   :  { %v938_v36 = vadd.f32 %v1626_v33, %v902_v2 }
 0x10c   :  { %v923_v5 = vadd.f32 %v1626_v33, %v887_v4 }
 0x10d   :  { %970 = vst [vmem:[%s1780_s4 + $0xe0] sm:$0xff] %v938_v36  ;;  %v486_v6 = vpop.f32.mrf.mxu2 }
 0x10e   :  { %v575_v57 = vpop.f32.mrf.mxu3  ;;  %955 = vst [vmem:[%s1780_s4 + $0x68] sm:$0xff] %v923_v5  ;;  %v449_v7 = vpop.f32.mrf.mxu0 }
 0x10f   :  { %v576_v11 = vadd.f32 %v575_v57, %v486_v6  ;;  %v538_v12 = vpop.f32.mrf.mxu1 }
 0x110   :  { %v539_v14 = vadd.f32 %v538_v12, %v449_v7 }
 0x111   :  { %v903_v13 = vmul.f32 %v862_v10, %v576_v11 }
 0x112   :  { %v888_v15 = vmul.f32 %v1628_v35, %v539_v14 }
 0x113   :  { %v939_v29 = vadd.f32 %v1626_v33, %v903_v13 }
 0x114   :  { %v924_v16 = vadd.f32 %v1626_v33, %v888_v15 }
 0x115   :  { %971 = vst [vmem:[%s1780_s4 + $0xe8] sm:$0xff] %v939_v29  ;;  %v489_v17 = vpop.f32.mrf.mxu2 }
 0x116   :  { %v578_v18 = vpop.f32.mrf.mxu3  ;;  %956 = vst [vmem:[%s1780_s4 + $0x70] sm:$0xff] %v924_v16  ;;  %v451_v24 = vpop.f32.mrf.mxu0 }
 0x117   :  { %v579_v19 = vadd.f32 %v578_v18, %v489_v17  ;;  %v540_v20 = vpop.f32.mrf.mxu1 }
 0x118   :  { %v541_v22 = vadd.f32 %v540_v20, %v451_v24 }
 0x119   :  { %v904_v21 = vmul.f32 %v867_v8, %v579_v19 }
 0x11a   :  { %v889_v23 = vmul.f32 %v1641_v51, %v541_v22 }
 0x11b   :  { %v940_v35 = vadd.f32 %v1626_v33, %v904_v21 }
 0x11c   :  { %v925_v30 = vadd.f32 %v1626_v33, %v889_v23 }
 0x11d   :  { %972 = vst [vmem:[%s1780_s4 + $0xf0] sm:$0xff] %v940_v35  ;;  %v491_v31 = vpop.f32.mrf.mxu2 }
 0x11e   :  { %v580_v32 = vpop.f32.mrf.mxu3  ;;  %957 = vst [vmem:[%s1780_s4 + $0x78] sm:$0xff] %v925_v30 }
 0x11f   :  { %v581_v34 = vadd.f32 %v580_v32, %v491_v31 }
 0x121   :  { %v905_v28 = vmul.f32 %v872_v37, %v581_v34 }
 0x123   :  { %v941_v38 = vadd.f32 %v1626_v33, %v905_v28 }
 0x125   :  { %973 = vst [vmem:[%s1780_s4 + $0xf8] sm:$0xff] %v941_v38 }

</bundles_post_ra>
